<compile_context>
chip_gen: v7x
topology: tpu7x:2x2x1
jax: 0.10.0
libtpu: 0.0.40
codegen_flags: <defaults>
</compile_context>

<pallas_src>
import functools

import jax
import jax.numpy as jnp
from jax import lax
from jax.experimental import pallas as pl
from jax.experimental.pallas import tpu as pltpu


# ----------------------------------------------------------------------------
# helpers
# ----------------------------------------------------------------------------

def _round_up(x, m):
    return (x + m - 1) // m * m


def _pad_last(a, target):
    pad = target - a.shape[-1]
    if pad == 0:
        return a
    return jnp.pad(a, [(0, 0)] * (a.ndim - 1) + [(0, pad)])


def fold_bn(conv_bias, gamma, beta, mean, var, eps=1e-5):
    """Fold eval-mode BatchNorm into per-channel (scale, bias) applied after the conv."""
    s = gamma / jnp.sqrt(var + eps)
    b = (conv_bias - mean) * s + beta
    return s.astype(jnp.float32), b.astype(jnp.float32)


def _prep_weight(w_oihw, cin_p, cout_p, dtype):
    """PyTorch (Cout,Cin,KH,KW) -> im2col-ordered (KH*KW*Cin_p, Cout_p), zero padded."""
    cout, cin, kh, kw = w_oihw.shape
    w = jnp.pad(w_oihw, ((0, cout_p - cout), (0, cin_p - cin), (0, 0), (0, 0)))
    w = jnp.transpose(w, (2, 3, 1, 0)).reshape(kh * kw * cin_p, cout_p)
    return w.astype(dtype)


def _prep_sb(v, cout_p):
    return _pad_last(v.astype(jnp.float32), cout_p).reshape(1, cout_p)


def _compiler_params():
    # v7x has only 64 MiB VMEM per TensorCore: keep the scoped limit at 32 MiB so the
    # pipeline retains double-buffering headroom on every generation.
    return pltpu.CompilerParams(
        dimension_semantics=("parallel", "parallel"),
        vmem_limit_bytes=32 * 1024 * 1024)


# ----------------------------------------------------------------------------
# Pallas kernels
# ----------------------------------------------------------------------------

def _conv1_ds_fused_kernel(p00_ref, p01_ref, p10_ref, p11_ref,
                           w1_ref, s1_ref, b1_ref,
                           w3_ref, s3_ref, b3_ref,
                           out_ref, skip_ref, *, cin, oh, ow):
    """3x3 stride-2 conv + BN + ReLU, fused with the 1x1 stride-2 skip conv + BN.

    Inputs are the four phase images P[p][q][n,u,v,:] = x_padded[n,2u+p,2v+q,:], so every
    tap is a contiguous shifted slice.  The 9 taps are concatenated along the (lane-dense)
    channel axis into one (oh*ow, 9*cin) slab and hit the MXU in a single matmul.
    The main output is written with a zeroed 1-pixel halo so conv2 needs no XLA-side pad.
    """
    phase = ((p00_ref, p01_ref), (p10_ref, p11_ref))
    taps = []
    for i in range(3):
        for j in range(3):
            a, p = divmod(i, 2)           # padded input row 2u+i = 2*(u+a)+p
            b, q = divmod(j, 2)
            taps.append(phase[p][q][0, a:a + oh, b:b + ow, :])       # (oh, ow, cin) bf16
    col = jnp.concatenate(taps, axis=-1).reshape(oh * ow, 9 * cin)   # in-VMEM im2col
    acc = jnp.dot(col, w1_ref[...], preferred_element_type=jnp.float32)
    y = jnp.maximum(acc * s1_ref[...] + b1_ref[...], 0.0)            # f32 BN + ReLU
    tn = out_ref.shape[-1]
    out_ref[...] = jnp.zeros_like(out_ref)                           # zero the halo
    out_ref[0, 1:1 + oh, 1:1 + ow, :] = y.reshape(oh, ow, tn).astype(out_ref.dtype)

    # 1x1 stride-2 skip conv: its input is exactly the center tap; re-slice the ref here
    # (ref slices are free) instead of keeping the value live across the main matmul.
    center = phase[1][1][0, 0:oh, 0:ow, :].reshape(oh * ow, cin)
    sk = jnp.dot(center, w3_ref[...], preferred_element_type=jnp.float32)
    sk = sk * s3_ref[...] + b3_ref[...]                               # no ReLU on skip
    skip_ref[...] = sk.reshape(skip_ref.shape).astype(skip_ref.dtype)


def _conv3x3_s1_kernel(x_ref, w_ref, s_ref, b_ref, *rest,
                       cin, oh, ow, add_residual, pad_output):
    """3x3 stride-1 conv + BN (+ residual add) + ReLU on a spatially pre-padded block."""
    if add_residual:
        r_ref, o_ref = rest
    else:
        (o_ref,) = rest
    taps = [x_ref[0, i:i + oh, j:j + ow, :] for i in range(3) for j in range(3)]
    col = jnp.concatenate(taps, axis=-1).reshape(oh * ow, 9 * cin)   # in-VMEM im2col
    y = jnp.dot(col, w_ref[...], preferred_element_type=jnp.float32)
    y = y * s_ref[...] + b_ref[...]
    if add_residual:
        y = y + r_ref[0].astype(jnp.float32)
    y = jnp.maximum(y, 0.0)
    tn = o_ref.shape[-1]
    if pad_output:
        o_ref[...] = jnp.zeros_like(o_ref)                           # zero the halo
        o_ref[0, 1:1 + oh, 1:1 + ow, :] = y.reshape(oh, ow, tn).astype(o_ref.dtype)
    else:
        o_ref[...] = y.reshape(o_ref.shape).astype(o_ref.dtype)      # flat (1, oh*ow, tn)


# ----------------------------------------------------------------------------
# pallas_call wrappers
# ----------------------------------------------------------------------------

def conv1_downsample_fused(x_nhwc, w1, s1, b1, w3, s3, b3, *, tn, compute_dtype):
    """x_nhwc already channel-padded to a lane multiple (cin_p)."""
    N, H, W, cin_p = x_nhwc.shape
    assert H % 2 == 0 and W % 2 == 0, "downsample path requires even H and W"
    OH, OW = H // 2, W // 2
    cout_p = w1.shape[-1]

    xp = jnp.pad(x_nhwc.astype(compute_dtype), ((0, 0), (1, 1), (1, 1), (0, 0)))
    # Phase-split so stride-2 taps become contiguous shifted slices inside the kernel.
    phases = [xp[:, p::2, q::2, :] for p in (0, 1) for q in (0, 1)]
    ph, pw = OH + 1, OW + 1

    phase_spec = pl.BlockSpec((1, ph, pw, cin_p), lambda j, n: (n, 0, 0, 0))
    w1_spec = pl.BlockSpec((9 * cin_p, tn), lambda j, n: (0, j))
    w3_spec = pl.BlockSpec((cin_p, tn), lambda j, n: (0, j))
    sb_spec = pl.BlockSpec((1, tn), lambda j, n: (0, j))
    out1_spec = pl.BlockSpec((1, OH + 2, OW + 2, tn), lambda j, n: (n, 0, 0, j))
    skip_spec = pl.BlockSpec((1, OH * OW, tn), lambda j, n: (n, 0, j))

    kernel = functools.partial(_conv1_ds_fused_kernel, cin=cin_p, oh=OH, ow=OW)
    out1_p, skip = pl.pallas_call(
        kernel,
        grid=(cout_p // tn, N),
        in_specs=[phase_spec] * 4 + [w1_spec, sb_spec, sb_spec,
                                     w3_spec, sb_spec, sb_spec],
        out_specs=(out1_spec, skip_spec),
        out_shape=(
            jax.ShapeDtypeStruct((N, OH + 2, OW + 2, cout_p), compute_dtype),  # halo'd
            jax.ShapeDtypeStruct((N, OH * OW, cout_p), compute_dtype)),        # bf16 skip
        compiler_params=_compiler_params(),
    )(phases[0], phases[1], phases[2], phases[3], w1, s1, b1, w3, s3, b3)
    return out1_p, skip


def conv3x3_s1_bn(x_padded, w, s, b, residual=None, *, tn, out_dtype, pad_output):
    """x_padded is (N, H+2, W+2, cin_p) with a 1-pixel spatial halo already present."""
    N, HP, WP, cin_p = x_padded.shape
    oh, ow = HP - 2, WP - 2
    cout_p = w.shape[-1]

    x_spec = pl.BlockSpec((1, HP, WP, cin_p), lambda j, n: (n, 0, 0, 0))
    w_spec = pl.BlockSpec((9 * cin_p, tn), lambda j, n: (0, j))
    sb_spec = pl.BlockSpec((1, tn), lambda j, n: (0, j))
    r_spec = pl.BlockSpec((1, oh * ow, tn), lambda j, n: (n, 0, j))
    if pad_output:
        o_spec = pl.BlockSpec((1, oh + 2, ow + 2, tn), lambda j, n: (n, 0, 0, j))
        out_shape = jax.ShapeDtypeStruct((N, oh + 2, ow + 2, cout_p), out_dtype)
    else:
        o_spec = pl.BlockSpec((1, oh * ow, tn), lambda j, n: (n, 0, j))
        out_shape = jax.ShapeDtypeStruct((N, oh * ow, cout_p), out_dtype)

    in_specs = [x_spec, w_spec, sb_spec, sb_spec]
    args = [x_padded, w, s, b]
    if residual is not None:
        in_specs.append(r_spec)
        args.append(residual)

    kernel = functools.partial(_conv3x3_s1_kernel, cin=cin_p, oh=oh, ow=ow,
                               add_residual=residual is not None, pad_output=pad_output)
    return pl.pallas_call(
        kernel,
        grid=(cout_p // tn, N),
        in_specs=in_specs,
        out_specs=o_spec,
        out_shape=out_shape,
        compiler_params=_compiler_params(),
    )(*args)


# ----------------------------------------------------------------------------
# one-time parameter packing (outside the per-forward jit)
# ----------------------------------------------------------------------------

def prepare_params(params, in_channels, *, downsample=True, compute_dtype=jnp.bfloat16):
    cout = int(params["w1"].shape[0])
    cin = int(in_channels)
    # Fill the 256-wide MXU N dim on v6e/v7x for wide layers; 128 otherwise (v5e-matched).
    tn = 256 if cout >= 192 else 128
    cout_p = _round_up(cout, tn)
    if downsample:
        cin_p = _round_up(cin, 128)        # lane-pad the contraction dim
    else:
        assert cin == cout, "identity skip requires in_channels == out_channels"
        cin_p = cout_p

    s1, b1 = fold_bn(params["b1"], params["g1"], params["be1"], params["m1"], params["v1"])
    s2, b2 = fold_bn(params["b2"], params["g2"], params["be2"], params["m2"], params["v2"])
    prepped = {
        "w1": _prep_weight(params["w1"], cin_p, cout_p, compute_dtype),    # (9*cin_p, cout_p)
        "w2": _prep_weight(params["w2"], cout_p, cout_p, compute_dtype),   # (9*cout_p, cout_p)
        "s1": _prep_sb(s1, cout_p), "b1": _prep_sb(b1, cout_p),
        "s2": _prep_sb(s2, cout_p), "b2": _prep_sb(b2, cout_p),
    }
    if downsample:
        s3, b3 = fold_bn(params["b3"], params["g3"], params["be3"], params["m3"], params["v3"])
        prepped["w3"] = _prep_weight(params["w3"], cin_p, cout_p, compute_dtype)  # (cin_p, cout_p)
        prepped["s3"] = _prep_sb(s3, cout_p)
        prepped["b3"] = _prep_sb(b3, cout_p)
    meta = {"cout": cout, "tn": tn}
    return prepped, meta


# ----------------------------------------------------------------------------
# ResBlock forward (NCHW in / NCHW out, matching the PyTorch module)
# ----------------------------------------------------------------------------

@functools.partial(jax.jit, static_argnames=("cout", "tn", "downsample", "compute_dtype"))
def resblock_forward(x_nchw, prepped, *, cout, tn, downsample=True,
                     compute_dtype=jnp.bfloat16):
    cin_p = prepped["w1"].shape[0] // 9
    cout_p = prepped["w1"].shape[1]

    x = jnp.transpose(x_nchw, (0, 2, 3, 1))                          # NHWC
    N, H, W, cin = x.shape
    # Lane-pad Cin once (bf16) so every activation block is lane-dense.
    x_c = jnp.pad(x.astype(compute_dtype), ((0, 0), (0, 0), (0, 0), (0, cin_p - cin)))

    if downsample:
        out1_p, skip = conv1_downsample_fused(
            x_c, prepped["w1"], prepped["s1"], prepped["b1"],
            prepped["w3"], prepped["s3"], prepped["b3"],
            tn=tn, compute_dtype=compute_dtype)
        OH, OW = H // 2, W // 2
    else:
        xp = jnp.pad(x_c, ((0, 0), (1, 1), (1, 1), (0, 0)))
        out1_p = conv3x3_s1_bn(xp, prepped["w1"], prepped["s1"], prepped["b1"], None,
                               tn=tn, out_dtype=compute_dtype, pad_output=True)
        skip = x_c.reshape(N, H * W, cin_p)                          # identity skip, bf16, flat
        OH, OW = H, W

    out = conv3x3_s1_bn(out1_p, prepped["w2"], prepped["s2"], prepped["b2"], skip,
                        tn=tn, out_dtype=jnp.float32, pad_output=False)
    out = out.reshape(N, OH, OW, cout_p)[..., :cout]                 # drop channel padding
    return jnp.transpose(out, (0, 3, 1, 2))                          # back to NCHW


# ----------------------------------------------------------------------------
# pure-JAX reference (mirrors the kernel's mixed-precision policy)
# ----------------------------------------------------------------------------

def _conv2d_ref(x_nchw, w, b, stride, padding, compute_dtype):
    y = lax.conv_general_dilated(
        x_nchw.astype(compute_dtype), w.astype(compute_dtype),
        (stride, stride), [(padding, padding)] * 2,
        dimension_numbers=("NCHW", "OIHW", "NCHW"),
        preferred_element_type=jnp.float32)
    return y + b[None, :, None, None]


def _bn_ref(y, gamma, beta, mean, var, eps=1e-5):
    sh = (1, -1, 1, 1)
    return ((y - mean.reshape(sh)) / jnp.sqrt(var.reshape(sh) + eps)
            * gamma.reshape(sh) + beta.reshape(sh))


def resblock_ref(x_nchw, p, downsample=True, compute_dtype=jnp.bfloat16):
    s1 = 2 if downsample else 1
    o = _bn_ref(_conv2d_ref(x_nchw, p["w1"], p["b1"], s1, 1, compute_dtype),
                p["g1"], p["be1"], p["m1"], p["v1"])
    o = jnp.maximum(o, 0.0).astype(compute_dtype).astype(jnp.float32)   # out1 stored bf16
    o = _bn_ref(_conv2d_ref(o, p["w2"], p["b2"], 1, 1, compute_dtype),
                p["g2"], p["be2"], p["m2"], p["v2"])
    if downsample:
        sk = _bn_ref(_conv2d_ref(x_nchw, p["w3"], p["b3"], 2, 0, compute_dtype),
                     p["g3"], p["be3"], p["m3"], p["v3"])
    else:
        sk = x_nchw
    sk = sk.astype(compute_dtype).astype(jnp.float32)                   # skip stored bf16
    return jnp.maximum(o + sk, 0.0)


# ----------------------------------------------------------------------------
# test harness
# ----------------------------------------------------------------------------

def make_params(key, cin, cout):
    ks = jax.random.split(key, 12)

    def bn(k, c):
        k0, k1, k2, k3 = jax.random.split(k, 4)
        return (1.0 + 0.1 * jax.random.normal(k0, (c,)),             # gamma
                0.1 * jax.random.normal(k1, (c,)),                    # beta
                0.1 * jax.random.normal(k2, (c,)),                    # running_mean
                0.5 + jnp.abs(jax.random.normal(k3, (c,))))           # running_var

    g1, be1, m1, v1 = bn(ks[0], cout)
    g2, be2, m2, v2 = bn(ks[1], cout)
    g3, be3, m3, v3 = bn(ks[2], cout)
    return {
        "w1": 0.1 * jax.random.normal(ks[3], (cout, cin, 3, 3)),
        "b1": 0.1 * jax.random.normal(ks[4], (cout,)),
        "g1": g1, "be1": be1, "m1": m1, "v1": v1,
        "w2": 0.1 * jax.random.normal(ks[5], (cout, cout, 3, 3)),
        "b2": 0.1 * jax.random.normal(ks[6], (cout,)),
        "g2": g2, "be2": be2, "m2": m2, "v2": v2,
        "w3": 0.1 * jax.random.normal(ks[7], (cout, cin, 1, 1)),
        "b3": 0.1 * jax.random.normal(ks[8], (cout,)),
        "g3": g3, "be3": be3, "m3": m3, "v3": v3,
    }


if __name__ == "__main__":
    key = jax.random.PRNGKey(0)
    kx, kp, kp2 = jax.random.split(key, 3)
    N, Cin, H, W = 2, 4, 16, 16
    Cout = 8

    # downsample=True: 3x3 s2 conv-bn-relu -> 3x3 s1 conv-bn, 1x1 s2 conv-bn skip, add, relu
    x = jax.random.normal(kx, (N, Cin, H, W), dtype=jnp.float32)
    params = make_params(kp, Cin, Cout)
    prepped, meta = prepare_params(params, Cin, downsample=True)
    out = jax.block_until_ready(
        resblock_forward(x, prepped, cout=meta["cout"], tn=meta["tn"], downsample=True))
    ref = resblock_ref(x, params, downsample=True)
    assert out.shape == (N, Cout, H // 2, W // 2), out.shape
    err = float(jnp.max(jnp.abs(out - ref)))
    assert err < 2e-2, f"downsample=True max abs err {err}"

    # downsample=False: identity skip (requires Cin == Cout)
    x2 = jax.random.normal(kx, (N, Cout, H, W), dtype=jnp.float32)
    params2 = make_params(kp2, Cout, Cout)
    prepped2, meta2 = prepare_params(params2, Cout, downsample=False)
    out2 = jax.block_until_ready(
        resblock_forward(x2, prepped2, cout=meta2["cout"], tn=meta2["tn"], downsample=False))
    ref2 = resblock_ref(x2, params2, downsample=False)
    assert out2.shape == (N, Cout, H, W), out2.shape
    err2 = float(jnp.max(jnp.abs(out2 - ref2)))
    assert err2 < 2e-2, f"downsample=False max abs err {err2}"

    print("KERNEL_OK")
</pallas_src>

<mosaic_0001>
module attributes {stable_mosaic.version = 11 : i64} {
  func.func @_conv3x3_s1_kernel(%arg0: i32, %arg1: i32, %arg2: memref<1x10x10x128xbf16, #tpu.memory_space<vmem>>, %arg3: memref<1152x128xbf16, #tpu.memory_space<vmem>>, %arg4: memref<1x128xf32, #tpu.memory_space<vmem>>, %arg5: memref<1x128xf32, #tpu.memory_space<vmem>>, %arg6: memref<1x64x128xbf16, #tpu.memory_space<vmem>>, %arg7: memref<1x64x128xf32, #tpu.memory_space<vmem>>) attributes {dimension_semantics = [#tpu.dimension_semantics<parallel>, #tpu.dimension_semantics<parallel>], iteration_bounds = array<i64: 1, 2>, scalar_prefetch = 0 : i64, scratch_operands = 0 : i64, tpu.core_type = #tpu.core_type<tc>, window_params = [{transform_indices = @transform_0, window_bounds = array<i64: 1, 10, 10, 128>}, {transform_indices = @transform_1, window_bounds = array<i64: 1152, 128>}, {transform_indices = @transform_2, window_bounds = array<i64: 1, 128>}, {transform_indices = @transform_3, window_bounds = array<i64: 1, 128>}, {transform_indices = @transform_4, window_bounds = array<i64: 1, 64, 128>}, {transform_indices = @transform_5, window_bounds = array<i64: 1, 64, 128>}]} {
    %c0 = arith.constant 0 : index
    %c0_0 = arith.constant 0 : index
    %c0_1 = arith.constant 0 : index
    %c0_2 = arith.constant 0 : index
    %0 = vector.load %arg2[%c0, %c0_0, %c0_1, %c0_2] : memref<1x10x10x128xbf16, #tpu.memory_space<vmem>>, vector<1x8x8x128xbf16>
    %1 = vector.shape_cast %0 : vector<1x8x8x128xbf16> to vector<8x8x128xbf16>
    %c0_3 = arith.constant 0 : index
    %c0_4 = arith.constant 0 : index
    %c1 = arith.constant 1 : index
    %c0_5 = arith.constant 0 : index
    %2 = vector.load %arg2[%c0_3, %c0_4, %c1, %c0_5] : memref<1x10x10x128xbf16, #tpu.memory_space<vmem>>, vector<1x8x8x128xbf16>
    %3 = vector.shape_cast %2 : vector<1x8x8x128xbf16> to vector<8x8x128xbf16>
    %c0_6 = arith.constant 0 : index
    %c0_7 = arith.constant 0 : index
    %c2 = arith.constant 2 : index
    %c0_8 = arith.constant 0 : index
    %4 = vector.load %arg2[%c0_6, %c0_7, %c2, %c0_8] : memref<1x10x10x128xbf16, #tpu.memory_space<vmem>>, vector<1x8x8x128xbf16>
    %5 = vector.shape_cast %4 : vector<1x8x8x128xbf16> to vector<8x8x128xbf16>
    %c0_9 = arith.constant 0 : index
    %c1_10 = arith.constant 1 : index
    %c0_11 = arith.constant 0 : index
    %c0_12 = arith.constant 0 : index
    %6 = vector.load %arg2[%c0_9, %c1_10, %c0_11, %c0_12] : memref<1x10x10x128xbf16, #tpu.memory_space<vmem>>, vector<1x8x8x128xbf16>
    %7 = vector.shape_cast %6 : vector<1x8x8x128xbf16> to vector<8x8x128xbf16>
    %c0_13 = arith.constant 0 : index
    %c1_14 = arith.constant 1 : index
    %c1_15 = arith.constant 1 : index
    %c0_16 = arith.constant 0 : index
    %8 = vector.load %arg2[%c0_13, %c1_14, %c1_15, %c0_16] : memref<1x10x10x128xbf16, #tpu.memory_space<vmem>>, vector<1x8x8x128xbf16>
    %9 = vector.shape_cast %8 : vector<1x8x8x128xbf16> to vector<8x8x128xbf16>
    %c0_17 = arith.constant 0 : index
    %c1_18 = arith.constant 1 : index
    %c2_19 = arith.constant 2 : index
    %c0_20 = arith.constant 0 : index
    %10 = vector.load %arg2[%c0_17, %c1_18, %c2_19, %c0_20] : memref<1x10x10x128xbf16, #tpu.memory_space<vmem>>, vector<1x8x8x128xbf16>
    %11 = vector.shape_cast %10 : vector<1x8x8x128xbf16> to vector<8x8x128xbf16>
    %c0_21 = arith.constant 0 : index
    %c2_22 = arith.constant 2 : index
    %c0_23 = arith.constant 0 : index
    %c0_24 = arith.constant 0 : index
    %12 = vector.load %arg2[%c0_21, %c2_22, %c0_23, %c0_24] : memref<1x10x10x128xbf16, #tpu.memory_space<vmem>>, vector<1x8x8x128xbf16>
    %13 = vector.shape_cast %12 : vector<1x8x8x128xbf16> to vector<8x8x128xbf16>
    %c0_25 = arith.constant 0 : index
    %c2_26 = arith.constant 2 : index
    %c1_27 = arith.constant 1 : index
    %c0_28 = arith.constant 0 : index
    %14 = vector.load %arg2[%c0_25, %c2_26, %c1_27, %c0_28] : memref<1x10x10x128xbf16, #tpu.memory_space<vmem>>, vector<1x8x8x128xbf16>
    %15 = vector.shape_cast %14 : vector<1x8x8x128xbf16> to vector<8x8x128xbf16>
    %c0_29 = arith.constant 0 : index
    %c2_30 = arith.constant 2 : index
    %c2_31 = arith.constant 2 : index
    %c0_32 = arith.constant 0 : index
    %16 = vector.load %arg2[%c0_29, %c2_30, %c2_31, %c0_32] : memref<1x10x10x128xbf16, #tpu.memory_space<vmem>>, vector<1x8x8x128xbf16>
    %17 = vector.shape_cast %16 : vector<1x8x8x128xbf16> to vector<8x8x128xbf16>
    %18 = tpu.concatenate %1, %3, %5, %7, %9, %11, %13, %15, %17 in 2 : vector<8x8x128xbf16>, vector<8x8x128xbf16>, vector<8x8x128xbf16>, vector<8x8x128xbf16>, vector<8x8x128xbf16>, vector<8x8x128xbf16>, vector<8x8x128xbf16>, vector<8x8x128xbf16>, vector<8x8x128xbf16> -> vector<8x8x1152xbf16>
    %19 = vector.shape_cast %18 : vector<8x8x1152xbf16> to vector<64x1152xbf16>
    %c0_33 = arith.constant 0 : index
    %c0_34 = arith.constant 0 : index
    %20 = vector.load %arg3[%c0_33, %c0_34] : memref<1152x128xbf16, #tpu.memory_space<vmem>>, vector<1152x128xbf16>
    %cst = arith.constant dense<0.000000e+00> : vector<64x128xf32>
    %21 = tpu.matmul %19, %20, %cst {dimension_numbers = #tpu.dot_dimension_numbers<[1], [0], [0], [1], [0, 0, 1, 1], [], []>} : vector<64x1152xbf16>, vector<1152x128xbf16>, vector<64x128xf32> -> vector<64x128xf32>
    %c0_35 = arith.constant 0 : index
    %c0_36 = arith.constant 0 : index
    %22 = vector.load %arg4[%c0_35, %c0_36] : memref<1x128xf32, #tpu.memory_space<vmem>>, vector<1x128xf32>
    %23 = vector.broadcast %22 : vector<1x128xf32> to vector<64x128xf32>
    %24 = arith.mulf %21, %23 : vector<64x128xf32>
    %c0_37 = arith.constant 0 : index
    %c0_38 = arith.constant 0 : index
    %25 = vector.load %arg5[%c0_37, %c0_38] : memref<1x128xf32, #tpu.memory_space<vmem>>, vector<1x128xf32>
    %26 = vector.broadcast %25 : vector<1x128xf32> to vector<64x128xf32>
    %27 = arith.addf %24, %26 : vector<64x128xf32>
    %c0_39 = arith.constant 0 : index
    %c0_40 = arith.constant 0 : index
    %c0_41 = arith.constant 0 : index
    %28 = vector.load %arg6[%c0_39, %c0_40, %c0_41] : memref<1x64x128xbf16, #tpu.memory_space<vmem>>, vector<1x64x128xbf16>
    %29 = vector.shape_cast %28 : vector<1x64x128xbf16> to vector<64x128xbf16>
    %30 = arith.extf %29 : vector<64x128xbf16> to vector<64x128xf32>
    %31 = arith.addf %27, %30 : vector<64x128xf32>
    %cst_42 = arith.constant 0.000000e+00 : f32
    %32 = vector.broadcast %cst_42 : f32 to vector<64x128xf32>
    %33 = arith.maximumf %31, %32 : vector<64x128xf32>
    %34 = vector.shape_cast %33 : vector<64x128xf32> to vector<1x64x128xf32>
    %c0_43 = arith.constant 0 : index
    %c0_44 = arith.constant 0 : index
    %c0_45 = arith.constant 0 : index
    %35 = vector.load %arg7[%c0_43, %c0_44, %c0_45] : memref<1x64x128xf32, #tpu.memory_space<vmem>>, vector<1x64x128xf32>
    tpu.vector_store %arg7[%c0_43, %c0_44, %c0_45], %34 {strides = array<i32>} : memref<1x64x128xf32, #tpu.memory_space<vmem>>, vector<1x64x128xf32>,
    return
  }
  func.func @transform_0(%arg0: i32, %arg1: i32) -> (i32, i32, i32, i32) {
    %c0_i32 = arith.constant 0 : i32
    %c0_i32_0 = arith.constant 0 : i32
    %c0_i32_1 = arith.constant 0 : i32
    %c0_i32_2 = arith.constant 0 : i32
    return %arg1, %c0_i32, %c0_i32_0, %c0_i32_1 : i32, i32, i32, i32
  }
  func.func @transform_1(%arg0: i32, %arg1: i32) -> (i32, i32) {
    %c0_i32 = arith.constant 0 : i32
    %c0_i32_0 = arith.constant 0 : i32
    return %c0_i32, %arg0 : i32, i32
  }
  func.func @transform_2(%arg0: i32, %arg1: i32) -> (i32, i32) {
    %c0_i32 = arith.constant 0 : i32
    %c0_i32_0 = arith.constant 0 : i32
    return %c0_i32, %arg0 : i32, i32
  }
  func.func @transform_3(%arg0: i32, %arg1: i32) -> (i32, i32) {
    %c0_i32 = arith.constant 0 : i32
    %c0_i32_0 = arith.constant 0 : i32
    return %c0_i32, %arg0 : i32, i32
  }
  func.func @transform_4(%arg0: i32, %arg1: i32) -> (i32, i32, i32) {
    %c0_i32 = arith.constant 0 : i32
    %c0_i32_0 = arith.constant 0 : i32
    return %arg1, %c0_i32, %arg0 : i32, i32, i32
  }
  func.func @transform_5(%arg0: i32, %arg1: i32) -> (i32, i32, i32) {
    %c0_i32 = arith.constant 0 : i32
    %c0_i32_0 = arith.constant 0 : i32
    return %arg1, %c0_i32, %arg0 : i32, i32, i32
  }
}

module attributes {stable_mosaic.version = 11 : i64} {
  func.func @_conv1_ds_fused_kernel(%arg0: i32, %arg1: i32, %arg2: memref<1x9x9x128xbf16, #tpu.memory_space<vmem>>, %arg3: memref<1x9x9x128xbf16, #tpu.memory_space<vmem>>, %arg4: memref<1x9x9x128xbf16, #tpu.memory_space<vmem>>, %arg5: memref<1x9x9x128xbf16, #tpu.memory_space<vmem>>, %arg6: memref<1152x128xbf16, #tpu.memory_space<vmem>>, %arg7: memref<1x128xf32, #tpu.memory_space<vmem>>, %arg8: memref<1x128xf32, #tpu.memory_space<vmem>>, %arg9: memref<128x128xbf16, #tpu.memory_space<vmem>>, %arg10: memref<1x128xf32, #tpu.memory_space<vmem>>, %arg11: memref<1x128xf32, #tpu.memory_space<vmem>>, %arg12: memref<1x10x10x128xbf16, #tpu.memory_space<vmem>>, %arg13: memref<1x64x128xbf16, #tpu.memory_space<vmem>>) attributes {dimension_semantics = [#tpu.dimension_semantics<parallel>, #tpu.dimension_semantics<parallel>], iteration_bounds = array<i64: 1, 2>, scalar_prefetch = 0 : i64, scratch_operands = 0 : i64, tpu.core_type = #tpu.core_type<tc>, window_params = [{transform_indices = @transform_0, window_bounds = array<i64: 1, 9, 9, 128>}, {transform_indices = @transform_1, window_bounds = array<i64: 1, 9, 9, 128>}, {transform_indices = @transform_2, window_bounds = array<i64: 1, 9, 9, 128>}, {transform_indices = @transform_3, window_bounds = array<i64: 1, 9, 9, 128>}, {transform_indices = @transform_4, window_bounds = array<i64: 1152, 128>}, {transform_indices = @transform_5, window_bounds = array<i64: 1, 128>}, {transform_indices = @transform_6, window_bounds = array<i64: 1, 128>}, {transform_indices = @transform_7, window_bounds = array<i64: 128, 128>}, {transform_indices = @transform_8, window_bounds = array<i64: 1, 128>}, {transform_indices = @transform_9, window_bounds = array<i64: 1, 128>}, {transform_indices = @transform_10, window_bounds = array<i64: 1, 10, 10, 128>}, {transform_indices = @transform_11, window_bounds = array<i64: 1, 64, 128>}]} {
    %c0 = arith.constant 0 : index
    %c0_0 = arith.constant 0 : index
    %c0_1 = arith.constant 0 : index
    %c0_2 = arith.constant 0 : index
    %0 = vector.load %arg2[%c0, %c0_0, %c0_1, %c0_2] : memref<1x9x9x128xbf16, #tpu.memory_space<vmem>>, vector<1x8x8x128xbf16>
    %1 = vector.shape_cast %0 : vector<1x8x8x128xbf16> to vector<8x8x128xbf16>
    %c0_3 = arith.constant 0 : index
    %c0_4 = arith.constant 0 : index
    %c0_5 = arith.constant 0 : index
    %c0_6 = arith.constant 0 : index
    %2 = vector.load %arg3[%c0_3, %c0_4, %c0_5, %c0_6] : memref<1x9x9x128xbf16, #tpu.memory_space<vmem>>, vector<1x8x8x128xbf16>
    %3 = vector.shape_cast %2 : vector<1x8x8x128xbf16> to vector<8x8x128xbf16>
    %c0_7 = arith.constant 0 : index
    %c0_8 = arith.constant 0 : index
    %c1 = arith.constant 1 : index
    %c0_9 = arith.constant 0 : index
    %4 = vector.load %arg2[%c0_7, %c0_8, %c1, %c0_9] : memref<1x9x9x128xbf16, #tpu.memory_space<vmem>>, vector<1x8x8x128xbf16>
    %5 = vector.shape_cast %4 : vector<1x8x8x128xbf16> to vector<8x8x128xbf16>
    %c0_10 = arith.constant 0 : index
    %c0_11 = arith.constant 0 : index
    %c0_12 = arith.constant 0 : index
    %c0_13 = arith.constant 0 : index
    %6 = vector.load %arg4[%c0_10, %c0_11, %c0_12, %c0_13] : memref<1x9x9x128xbf16, #tpu.memory_space<vmem>>, vector<1x8x8x128xbf16>
    %7 = vector.shape_cast %6 : vector<1x8x8x128xbf16> to vector<8x8x128xbf16>
    %c0_14 = arith.constant 0 : index
    %c0_15 = arith.constant 0 : index
    %c0_16 = arith.constant 0 : index
    %c0_17 = arith.constant 0 : index
    %8 = vector.load %arg5[%c0_14, %c0_15, %c0_16, %c0_17] : memref<1x9x9x128xbf16, #tpu.memory_space<vmem>>, vector<1x8x8x128xbf16>
    %9 = vector.shape_cast %8 : vector<1x8x8x128xbf16> to vector<8x8x128xbf16>
    %c0_18 = arith.constant 0 : index
    %c0_19 = arith.constant 0 : index
    %c1_20 = arith.constant 1 : index
    %c0_21 = arith.constant 0 : index
    %10 = vector.load %arg4[%c0_18, %c0_19, %c1_20, %c0_21] : memref<1x9x9x128xbf16, #tpu.memory_space<vmem>>, vector<1x8x8x128xbf16>
    %11 = vector.shape_cast %10 : vector<1x8x8x128xbf16> to vector<8x8x128xbf16>
    %c0_22 = arith.constant 0 : index
    %c1_23 = arith.constant 1 : index
    %c0_24 = arith.constant 0 : index
    %c0_25 = arith.constant 0 : index
    %12 = vector.load %arg2[%c0_22, %c1_23, %c0_24, %c0_25] : memref<1x9x9x128xbf16, #tpu.memory_space<vmem>>, vector<1x8x8x128xbf16>
    %13 = vector.shape_cast %12 : vector<1x8x8x128xbf16> to vector<8x8x128xbf16>
    %c0_26 = arith.constant 0 : index
    %c1_27 = arith.constant 1 : index
    %c0_28 = arith.constant 0 : index
    %c0_29 = arith.constant 0 : index
    %14 = vector.load %arg3[%c0_26, %c1_27, %c0_28, %c0_29] : memref<1x9x9x128xbf16, #tpu.memory_space<vmem>>, vector<1x8x8x128xbf16>
    %15 = vector.shape_cast %14 : vector<1x8x8x128xbf16> to vector<8x8x128xbf16>
    %c0_30 = arith.constant 0 : index
    %c1_31 = arith.constant 1 : index
    %c1_32 = arith.constant 1 : index
    %c0_33 = arith.constant 0 : index
    %16 = vector.load %arg2[%c0_30, %c1_31, %c1_32, %c0_33] : memref<1x9x9x128xbf16, #tpu.memory_space<vmem>>, vector<1x8x8x128xbf16>
    %17 = vector.shape_cast %16 : vector<1x8x8x128xbf16> to vector<8x8x128xbf16>
    %18 = tpu.concatenate %1, %3, %5, %7, %9, %11, %13, %15, %17 in 2 : vector<8x8x128xbf16>, vector<8x8x128xbf16>, vector<8x8x128xbf16>, vector<8x8x128xbf16>, vector<8x8x128xbf16>, vector<8x8x128xbf16>, vector<8x8x128xbf16>, vector<8x8x128xbf16>, vector<8x8x128xbf16> -> vector<8x8x1152xbf16>
    %19 = vector.shape_cast %18 : vector<8x8x1152xbf16> to vector<64x1152xbf16>
    %c0_34 = arith.constant 0 : index
    %c0_35 = arith.constant 0 : index
    %20 = vector.load %arg6[%c0_34, %c0_35] : memref<1152x128xbf16, #tpu.memory_space<vmem>>, vector<1152x128xbf16>
    %cst = arith.constant dense<0.000000e+00> : vector<64x128xf32>
    %21 = tpu.matmul %19, %20, %cst {dimension_numbers = #tpu.dot_dimension_numbers<[1], [0], [0], [1], [0, 0, 1, 1], [], []>} : vector<64x1152xbf16>, vector<1152x128xbf16>, vector<64x128xf32> -> vector<64x128xf32>
    %c0_36 = arith.constant 0 : index
    %c0_37 = arith.constant 0 : index
    %22 = vector.load %arg7[%c0_36, %c0_37] : memref<1x128xf32, #tpu.memory_space<vmem>>, vector<1x128xf32>
    %23 = vector.broadcast %22 : vector<1x128xf32> to vector<64x128xf32>
    %24 = arith.mulf %21, %23 : vector<64x128xf32>
    %c0_38 = arith.constant 0 : index
    %c0_39 = arith.constant 0 : index
    %25 = vector.load %arg8[%c0_38, %c0_39] : memref<1x128xf32, #tpu.memory_space<vmem>>, vector<1x128xf32>
    %26 = vector.broadcast %25 : vector<1x128xf32> to vector<64x128xf32>
    %27 = arith.addf %24, %26 : vector<64x128xf32>
    %cst_40 = arith.constant 0.000000e+00 : f32
    %28 = vector.broadcast %cst_40 : f32 to vector<64x128xf32>
    %29 = arith.maximumf %27, %28 : vector<64x128xf32>
    %cst_41 = arith.constant 0.000000e+00 : bf16
    %30 = vector.broadcast %cst_41 : bf16 to vector<1x10x10x128xbf16>
    %c0_42 = arith.constant 0 : index
    %c0_43 = arith.constant 0 : index
    %c0_44 = arith.constant 0 : index
    %c0_45 = arith.constant 0 : index
    %31 = vector.load %arg12[%c0_42, %c0_43, %c0_44, %c0_45] : memref<1x10x10x128xbf16, #tpu.memory_space<vmem>>, vector<1x10x10x128xbf16>
    tpu.vector_store %arg12[%c0_42, %c0_43, %c0_44, %c0_45], %30 {strides = array<i32>} : memref<1x10x10x128xbf16, #tpu.memory_space<vmem>>, vector<1x10x10x128xbf16>,
    %32 = vector.shape_cast %29 : vector<64x128xf32> to vector<8x8x128xf32>
    %33 = arith.truncf %32 : vector<8x8x128xf32> to vector<8x8x128xbf16>
    %c0_46 = arith.constant 0 : index
    %c1_47 = arith.constant 1 : index
    %c1_48 = arith.constant 1 : index
    %c0_49 = arith.constant 0 : index
    %34 = vector.load %arg12[%c0_46, %c1_47, %c1_48, %c0_49] : memref<1x10x10x128xbf16, #tpu.memory_space<vmem>>, vector<1x8x8x128xbf16>
    %35 = vector.shape_cast %34 : vector<1x8x8x128xbf16> to vector<8x8x128xbf16>
    %36 = vector.shape_cast %33 : vector<8x8x128xbf16> to vector<1x8x8x128xbf16>
    tpu.vector_store %arg12[%c0_46, %c1_47, %c1_48, %c0_49], %36 {strides = array<i32>} : memref<1x10x10x128xbf16, #tpu.memory_space<vmem>>, vector<1x8x8x128xbf16>,
    %c0_50 = arith.constant 0 : index
    %c0_51 = arith.constant 0 : index
    %c0_52 = arith.constant 0 : index
    %c0_53 = arith.constant 0 : index
    %37 = vector.load %arg5[%c0_50, %c0_51, %c0_52, %c0_53] : memref<1x9x9x128xbf16, #tpu.memory_space<vmem>>, vector<1x8x8x128xbf16>
    %38 = vector.shape_cast %37 : vector<1x8x8x128xbf16> to vector<8x8x128xbf16>
    %39 = vector.shape_cast %38 : vector<8x8x128xbf16> to vector<64x128xbf16>
    %c0_54 = arith.constant 0 : index
    %c0_55 = arith.constant 0 : index
    %40 = vector.load %arg9[%c0_54, %c0_55] : memref<128x128xbf16, #tpu.memory_space<vmem>>, vector<128x128xbf16>
    %cst_56 = arith.constant dense<0.000000e+00> : vector<64x128xf32>
    %41 = tpu.matmul %39, %40, %cst_56 {dimension_numbers = #tpu.dot_dimension_numbers<[1], [0], [0], [1], [0, 0, 1, 1], [], []>} : vector<64x128xbf16>, vector<128x128xbf16>, vector<64x128xf32> -> vector<64x128xf32>
    %c0_57 = arith.constant 0 : index
    %c0_58 = arith.constant 0 : index
    %42 = vector.load %arg10[%c0_57, %c0_58] : memref<1x128xf32, #tpu.memory_space<vmem>>, vector<1x128xf32>
    %43 = vector.broadcast %42 : vector<1x128xf32> to vector<64x128xf32>
    %44 = arith.mulf %41, %43 : vector<64x128xf32>
    %c0_59 = arith.constant 0 : index
    %c0_60 = arith.constant 0 : index
    %45 = vector.load %arg11[%c0_59, %c0_60] : memref<1x128xf32, #tpu.memory_space<vmem>>, vector<1x128xf32>
    %46 = vector.broadcast %45 : vector<1x128xf32> to vector<64x128xf32>
    %47 = arith.addf %44, %46 : vector<64x128xf32>
    %48 = vector.shape_cast %47 : vector<64x128xf32> to vector<1x64x128xf32>
    %49 = arith.truncf %48 : vector<1x64x128xf32> to vector<1x64x128xbf16>
    %c0_61 = arith.constant 0 : index
    %c0_62 = arith.constant 0 : index
    %c0_63 = arith.constant 0 : index
    %50 = vector.load %arg13[%c0_61, %c0_62, %c0_63] : memref<1x64x128xbf16, #tpu.memory_space<vmem>>, vector<1x64x128xbf16>
    tpu.vector_store %arg13[%c0_61, %c0_62, %c0_63], %49 {strides = array<i32>} : memref<1x64x128xbf16, #tpu.memory_space<vmem>>, vector<1x64x128xbf16>,
    return
  }
  func.func @transform_0(%arg0: i32, %arg1: i32) -> (i32, i32, i32, i32) {
    %c0_i32 = arith.constant 0 : i32
    %c0_i32_0 = arith.constant 0 : i32
    %c0_i32_1 = arith.constant 0 : i32
    %c0_i32_2 = arith.constant 0 : i32
    return %arg1, %c0_i32, %c0_i32_0, %c0_i32_1 : i32, i32, i32, i32
  }
  func.func @transform_1(%arg0: i32, %arg1: i32) -> (i32, i32, i32, i32) {
    %c0_i32 = arith.constant 0 : i32
    %c0_i32_0 = arith.constant 0 : i32
    %c0_i32_1 = arith.constant 0 : i32
    %c0_i32_2 = arith.constant 0 : i32
    return %arg1, %c0_i32, %c0_i32_0, %c0_i32_1 : i32, i32, i32, i32
  }
  func.func @transform_2(%arg0: i32, %arg1: i32) -> (i32, i32, i32, i32) {
    %c0_i32 = arith.constant 0 : i32
    %c0_i32_0 = arith.constant 0 : i32
    %c0_i32_1 = arith.constant 0 : i32
    %c0_i32_2 = arith.constant 0 : i32
    return %arg1, %c0_i32, %c0_i32_0, %c0_i32_1 : i32, i32, i32, i32
  }
  func.func @transform_3(%arg0: i32, %arg1: i32) -> (i32, i32, i32, i32) {
    %c0_i32 = arith.constant 0 : i32
    %c0_i32_0 = arith.constant 0 : i32
    %c0_i32_1 = arith.constant 0 : i32
    %c0_i32_2 = arith.constant 0 : i32
    return %arg1, %c0_i32, %c0_i32_0, %c0_i32_1 : i32, i32, i32, i32
  }
  func.func @transform_4(%arg0: i32, %arg1: i32) -> (i32, i32) {
    %c0_i32 = arith.constant 0 : i32
    %c0_i32_0 = arith.constant 0 : i32
    return %c0_i32, %arg0 : i32, i32
  }
  func.func @transform_5(%arg0: i32, %arg1: i32) -> (i32, i32) {
    %c0_i32 = arith.constant 0 : i32
    %c0_i32_0 = arith.constant 0 : i32
    return %c0_i32, %arg0 : i32, i32
  }
  func.func @transform_6(%arg0: i32, %arg1: i32) -> (i32, i32) {
    %c0_i32 = arith.constant 0 : i32
    %c0_i32_0 = arith.constant 0 : i32
    return %c0_i32, %arg0 : i32, i32
  }
  func.func @transform_7(%arg0: i32, %arg1: i32) -> (i32, i32) {
    %c0_i32 = arith.constant 0 : i32
    %c0_i32_0 = arith.constant 0 : i32
    return %c0_i32, %arg0 : i32, i32
  }
  func.func @transform_8(%arg0: i32, %arg1: i32) -> (i32, i32) {
    %c0_i32 = arith.constant 0 : i32
    %c0_i32_0 = arith.constant 0 : i32
    return %c0_i32, %arg0 : i32, i32
  }
  func.func @transform_9(%arg0: i32, %arg1: i32) -> (i32, i32) {
    %c0_i32 = arith.constant 0 : i32
    %c0_i32_0 = arith.constant 0 : i32
    return %c0_i32, %arg0 : i32, i32
  }
  func.func @transform_10(%arg0: i32, %arg1: i32) -> (i32, i32, i32, i32) {
    %c0_i32 = arith.constant 0 : i32
    %c0_i32_0 = arith.constant 0 : i32
    %c0_i32_1 = arith.constant 0 : i32
    return %arg1, %c0_i32, %c0_i32_0, %arg0 : i32, i32, i32, i32
  }
  func.func @transform_11(%arg0: i32, %arg1: i32) -> (i32, i32, i32) {
    %c0_i32 = arith.constant 0 : i32
    %c0_i32_0 = arith.constant 0 : i32
    return %arg1, %c0_i32, %arg0 : i32, i32, i32
  }
}

</mosaic_0001>

<bundles_post_ra>
// kernel: resblock_forward.3
= control target key start
LH: loop header
LB: loop body
LE: loop exit
PB: predicated region body
PF: predicated region fallthrough
CT: control target
= control target key end

     0   :  { %s2671_s18 = smov 0   ;;  %s2673_s19 = smov 0   ;;  %s3243_s0 = inlined_call_operand.vmem [shape: bf16[2,10,10,128], index: 0, kind: input, shape index: {}]   ;;  %s3244_s1 = inlined_call_operand.vmem [shape: bf16[1152,128], index: 1, kind: input, shape index: {}]   ;;  %s3245_s2 = inlined_call_operand.vmem [shape: f32[1,128], index: 2, kind: input, shape index: {}]   ;;  %s3246_s3 = inlined_call_operand.vmem [shape: f32[1,128], index: 3, kind: input, shape index: {}]   ;;  %s3247_s4 = inlined_call_operand.vmem [shape: bf16[2,64,128], index: 4, kind: input, shape index: {}]   ;;  %s3248_s5 = inlined_call_operand.vmem [shape: f32[2,64,128], index: 5, kind: output, shape index: {}]  }
   0x1   :  { %s2675_s20 = smov 0  }
   0x2 LB: > { %s24_s21 = sadd.s32 1, %s2635_s19  ;;  %p2013_p0 = scmp.ge.s32.totalorder %s2639_s20, 1  ;;  %s2639_s20 = sphi %s2675_s20, %s15_s20   ;;  %s2635_s19 = sphi %s2673_s19, %s3250_s19   ;;  %s2631_s18 = sphi %s2671_s18, %s3249_s18  }
   0x3   : > { %p25_p1 = scmp.ge.s32.totalorder %s24_s21, 2  ;;  %p241_p2 = scmp.lt.s32.totalorder %s2639_s20, 3 }
   0x5   : > { %s3252_s21 = smov (%p25_p1, %s24_s21), 0  ;;  %p242_p3 = pnand %p2013_p0, %p241_p2 }
   0x6   : > { %v2485_v0 = vld [vmem:[%s3244_s1 + $0x40] sm:$0xff] (!%p242_p3)   ;;  %v2489_v4 = vld [vmem:[%s3244_s1 + $0x48] sm:$0xff] (!%p242_p3)   ;;  %v2493_v8 = vld [vmem:[%s3244_s1 + $0x50] sm:$0xff] (!%p242_p3)   ;;  %p290_p4 = scmp.lt.s32.totalorder (!%p242_p3), %s2631_s18, 1 }
   0x7   : > { %245 = sbr.rel (%p242_p3) target bundleno = 333 (0x14d), region = 40  ;;  %v2486_v1 = vld [vmem:[%s3244_s1 + $0xc0] sm:$0xff] (!%p242_p3)   ;;  %2248 = vmatprep.subr.bf16.mxu0 (!%p242_p3), %v2485_v0  ;;  %v2490_v5 = vld [vmem:[%s3244_s1 + $0xc8] sm:$0xff] (!%p242_p3)   ;;  %v2494_v9 = vld [vmem:[%s3244_s1 + $0xd0] sm:$0xff] (!%p242_p3)  }
   0x8   : > { %v2487_v2 = vld [vmem:[%s3244_s1] sm:$0xff] (!%p242_p3)   ;;  %2288 = vmatprep.subr.bf16.mxu1 (!%p242_p3), %v2486_v1  ;;  %v2491_v6 = vld [vmem:[%s3244_s1 + $0x8] sm:$0xff] (!%p242_p3)   ;;  %v2495_v10 = vld [vmem:[%s3244_s1 + $0x10] sm:$0xff] (!%p242_p3)  }
   0x9   : > { %v2488_v3 = vld [vmem:[%s3244_s1 + $0x80] sm:$0xff] (!%p242_p3)   ;;  %2249 = vmatpush3.bf16.msra.mxu0 (!%p242_p3), %v2487_v2  ;;  %v2492_v7 = vld [vmem:[%s3244_s1 + $0x88] sm:$0xff] (!%p242_p3)   ;;  %v2496_v11 = vld [vmem:[%s3244_s1 + $0x90] sm:$0xff] (!%p242_p3)  }
   0xa   : > { %2289 = vmatpush3.bf16.msra.mxu1 (!%p242_p3), %v2488_v3  ;;  %2250 = vmatprep.subr.bf16.mxu0 (!%p242_p3), %v2489_v4  ;;  %v2497_v12 = vld [vmem:[%s3244_s1 + $0x58] sm:$0xff] (!%p242_p3)   ;;  %v2501_v16 = vld [vmem:[%s3244_s1 + $0x60] sm:$0xff] (!%p242_p3)   ;;  %v2505_v20 = vld [vmem:[%s3244_s1 + $0x68] sm:$0xff] (!%p242_p3)  }
   0xb   : > { %2290 = vmatprep.subr.bf16.mxu1 (!%p242_p3), %v2490_v5  ;;  %v2498_v13 = vld [vmem:[%s3244_s1 + $0xd8] sm:$0xff] (!%p242_p3)   ;;  %v2502_v17 = vld [vmem:[%s3244_s1 + $0xe0] sm:$0xff] (!%p242_p3)   ;;  %v2506_v21 = vld [vmem:[%s3244_s1 + $0xe8] sm:$0xff] (!%p242_p3)  }
   0xc   : > { %v2499_v14 = vld [vmem:[%s3244_s1 + $0x18] sm:$0xff] (!%p242_p3)   ;;  %v2503_v18 = vld [vmem:[%s3244_s1 + $0x20] sm:$0xff] (!%p242_p3)   ;;  %v2507_v22 = vld [vmem:[%s3244_s1 + $0x28] sm:$0xff] (!%p242_p3)  }
   0xd   : > { %2251 = vmatpush3.bf16.msra.mxu0 (!%p242_p3), %v2491_v6  ;;  %v2500_v15 = vld [vmem:[%s3244_s1 + $0x98] sm:$0xff] (!%p242_p3)   ;;  %v2504_v19 = vld [vmem:[%s3244_s1 + $0xa0] sm:$0xff] (!%p242_p3)   ;;  %v2508_v23 = vld [vmem:[%s3244_s1 + $0xa8] sm:$0xff] (!%p242_p3)  }
   0xe   : > { %2291 = vmatpush3.bf16.msra.mxu1 %v2492_v7  ;;  %2252 = vmatprep.subr.bf16.mxu0 %v2493_v8  ;;  %s3254_s18 = smov (!%p290_p4, %s2631_s18), 1  ;;  %v2509_v24 = vld [vmem:[%s3244_s1 + $0x70] sm:$0xff]   ;;  %v2513_v28 = vld [vmem:[%s3244_s1 + $0x78] sm:$0xff]   ;;  %v2527_v49 = vld [vmem:[%s3244_s1 + $0x140] sm:$0xff]  }
   0xf   : > { %2292 = vmatprep.subr.bf16.mxu1 %v2494_v9  ;;  %v2510_v25 = vld [vmem:[%s3244_s1 + $0xf0] sm:$0xff]   ;;  %s2460_s7 = smul.u32 80, %s3254_s18  ;;  %v2514_v29 = vld [vmem:[%s3244_s1 + $0xf8] sm:$0xff]   ;;  %v2528_v50 = vld [vmem:[%s3244_s1 + $0x1c0] sm:$0xff]   ;;  %s2228_s9 = sshll.u32 %s3254_s18, 6 }
  0x10   : > { %v2511_v26 = vld [vmem:[%s3244_s1 + $0x30] sm:$0xff]   ;;  %v2515_v30 = vld [vmem:[%s3244_s1 + $0x38] sm:$0xff]   ;;  %v2529_v55 = vld [vmem:[%s3244_s1 + $0x100] sm:$0xff]   ;;  %s3224_s12 = scalar_lea.vmem %s3248_s5, %s2228_s9 }
  0x11   : > { %2253 = vmatpush3.bf16.msra.mxu0 %v2495_v10  ;;  %v2512_v27 = vld [vmem:[%s3244_s1 + $0xb0] sm:$0xff]   ;;  %s2789_s22 = scalar_lea.vmem %s3243_s0, %s2460_s7  ;;  %v2516_v31 = vld [vmem:[%s3244_s1 + $0xb8] sm:$0xff]   ;;  %v2530_v56 = vld [vmem:[%s3244_s1 + $0x180] sm:$0xff]  }
  0x12   : > { %2293 = vmatpush3.bf16.msra.mxu1 %v2496_v11  ;;  %2254 = vmatprep.subr.bf16.mxu0 %v2497_v12  ;;  %v322_v32 = vld [vmem:[%s2789_s22] sm:$0xf]  ;;  %v323_v33 = vld [vmem:[%s2789_s22 + $0x8] sm:$0xf]  ;;  %v330_v34 = vld [vmem:[%s2789_s22 + $0x4] sm:$0x1] }
  0x13   : > { %2294 = vmatprep.subr.bf16.mxu1 %v2498_v13  ;;  %v331_v35 = vld [vmem:[%s2789_s22 + $0xc] sm:$0x1]  ;;  %v2067_v36 = vcombine.low %v322_v32, %v330_v34  ;;  %v2802_v37 = vld [vmem:[%s2789_s22 + $0x8] sm:$0xf]  ;;  %v2805_v38 = vld [vmem:[%s2789_s22 + $0x10] sm:$0xf]  ;;  %v2115_v57 = vcombine.low %v322_v32, %v323_v33 }
  0x14   : > { %v2068_v39 = vcombine.low %v323_v33, %v331_v35  ;;  %v2118_v40 = vcombine.low %v2802_v37, %v2805_v38  ;;  %v338_v43 = vld [vmem:[%s2789_s22] sm:$0xe]  ;;  %v339_v46 = vld [vmem:[%s2789_s22 + $0x8] sm:$0xe]  ;;  %v324_v2 = vld [vmem:[%s2789_s22 + $0x10] sm:$0xf] }
  0x15   : > { %2255 = vmatpush3.bf16.msra.mxu0 %v2499_v14  ;;  %v437_v41 = vshrl.u32 %v2067_v36, 16  ;;  %v439_v42 = vshll.u32 %v2067_v36, 16  ;;  %v2075_v52 = vcombine.low %v338_v43, %v330_v34  ;;  %v2076_v53 = vcombine.low %v339_v46, %v331_v35  ;;  %v2531_v61 = vld [vmem:[%s3244_s1 + $0x148] sm:$0xff]   ;;  %v325_v3 = vld [vmem:[%s2789_s22 + $0x18] sm:$0xf] }
  0x16   : > { %2295 = vmatpush3.bf16.msra.mxu1 %v2500_v15  ;;  %2256 = vmatprep.subr.bf16.mxu0 %v2501_v16  ;;  %v444_v44 = vshrl.u32 %v2068_v39, 16  ;;  %v446_v45 = vshll.u32 %v2068_v39, 16  ;;  %v2532_v63 = vld [vmem:[%s3244_s1 + $0x1c8] sm:$0xff]   ;;  %v332_v4 = vld [vmem:[%s2789_s22 + $0x14] sm:$0x1]  ;;  %v2124_v35 = vcombine.low %v324_v2, %v325_v3  ;;  %v2547_v36 = vld [vmem:[%s3244_s1 + $0x158] sm:$0xff]  }
  0x17   : > { %2296 = vmatprep.subr.bf16.mxu1 %v2502_v17  ;;  %1573 = vmatprep.mubr.bf16.mxu1 %v2118_v40  ;;  %v441_v47 = vrot.slane %v439_v42, 1  ;;  %v516_v58 = vrot.slane %v2075_v52, 1  ;;  %v517_v59 = vrot.slane %v2076_v53, 1  ;;  %v2533_v0 = vld [vmem:[%s3244_s1 + $0x108] sm:$0xff]   ;;  %v333_v5 = vld [vmem:[%s2789_s22 + $0x1c] sm:$0x1]  ;;  %v2069_v6 = vcombine.low %v324_v2, %v332_v4 }
  0x18   : > { %v448_v48 = vrot.slane %v446_v45, 1  ;;  %v2534_v1 = vld [vmem:[%s3244_s1 + $0x188] sm:$0xff]   ;;  %v2840_v7 = vld [vmem:[%s2789_s22 + $0x18] sm:$0xf]  ;;  %v2843_v8 = vld [vmem:[%s2789_s22 + $0x20] sm:$0xf]  ;;  %v2070_v9 = vcombine.low %v325_v3, %v333_v5 }
  0x19   : > { %2257 = vmatpush3.bf16.msra.mxu0 %v2503_v18  ;;  %v442_v51 = vor.u32 %v441_v47, %v437_v41  ;;  %v2117_v62 = vcombine.low %v516_v58, %v517_v59  ;;  %v2127_v10 = vcombine.low %v2840_v7, %v2843_v8  ;;  %v340_v11 = vld [vmem:[%s2789_s22 + $0x10] sm:$0xe]  ;;  %v2849_v12 = vld [vmem:[%s2789_s22 + $0xc] sm:$0x1]  ;;  %v451_v13 = vshrl.u32 %v2069_v6, 16  ;;  %v2549_v42 = vld [vmem:[%s3244_s1 + $0x118] sm:$0xff]  }
  0x1a   : > { %2297 = vmatpush3.bf16.msra.mxu1 %v2504_v19  ;;  %2258 = vmatprep.subr.bf16.mxu0 %v2505_v20  ;;  %v449_v54 = vor.u32 %v448_v48, %v444_v44  ;;  %v453_v14 = vshll.u32 %v2069_v6, 16  ;;  %v341_v15 = vld [vmem:[%s2789_s22 + $0x18] sm:$0xe]  ;;  %v458_v16 = vshrl.u32 %v2070_v9, 16  ;;  %v460_v17 = vshll.u32 %v2070_v9, 16  ;;  %v2543_v20 = vld [vmem:[%s3244_s1 + $0x150] sm:$0xff]  }
  0x1b   : > { %2298 = vmatprep.subr.bf16.mxu1 %v2506_v21  ;;  %v2077_v18 = vcombine.low %v340_v11, %v332_v4  ;;  %v2078_v19 = vcombine.low %v341_v15, %v333_v5  ;;  %v2544_v21 = vld [vmem:[%s3244_s1 + $0x1d0] sm:$0xff]   ;;  %v2869_v32 = vcombine.low %v2802_v37, %v2849_v12  ;;  %v2548_v37 = vld [vmem:[%s3244_s1 + $0x1d8] sm:$0xff]   ;;  %v326_v44 = vld [vmem:[%s2789_s22 + $0x20] sm:$0xf] }
  0x1c   : > { %v2116_v60 = vcombine.low %v442_v51, %v449_v54  ;;  %v2550_v43 = vld [vmem:[%s3244_s1 + $0x198] sm:$0xff]   ;;  %v327_v45 = vld [vmem:[%s2789_s22 + $0x28] sm:$0xf]  ;;  %v334_v48 = vld [vmem:[%s2789_s22 + $0x24] sm:$0x1] }
  0x1d   : > { %2259 = vmatpush3.bf16.msra.mxu0 %v2507_v22  ;;  %v2028_v22 = vld [vmem:[%s2789_s22 + $0x14] sm:$0x1]  ;;  %v565_v41 = vshrl.u32 %v2869_v32, 16  ;;  %v2899_v53 = vld [vmem:[%s2789_s22 + $0x1c] sm:$0x1]  ;;  %v2071_v54 = vcombine.low %v326_v44, %v334_v48  ;;  %v2559_v5 = vld [vmem:[%s3244_s1 + $0x160] sm:$0xff]  }
  0x1e   : > { %2299 = vmatpush3.bf16.msra.mxu1 %v2508_v23  ;;  %2260 = vmatprep.subr.bf16.mxu0 %v2509_v24  ;;  %v455_v23 = vrot.slane %v453_v14, 1  ;;  %v2545_v24 = vld [vmem:[%s3244_s1 + $0x110] sm:$0xff]   ;;  %v2875_v39 = vcombine.low %v2805_v38, %v2028_v22  ;;  %v567_v38 = vshll.u32 %v2869_v32, 16  ;;  %v342_v59 = vld [vmem:[%s2789_s22 + $0x20] sm:$0xe]  ;;  %v2923_v9 = vcombine.low %v2840_v7, %v2899_v53 }
  0x1f   : > { %2300 = vmatprep.subr.bf16.mxu1 %v2510_v25  ;;  %1508 = vmatprep.mubr.bf16.mxu0 %v2116_v60  ;;  %v462_v25 = vrot.slane %v460_v17, 1  ;;  %v343_v60 = vld [vmem:[%s2789_s22 + $0x28] sm:$0xe]  ;;  %v2079_v3 = vcombine.low %v342_v59, %v334_v48  ;;  %v2560_v6 = vld [vmem:[%s3244_s1 + $0x1e0] sm:$0xff]   ;;  %v3042_v32 = vld [vmem:[%s2789_s22 + $0x1c] sm:$0x1] }
  0x20   : > { %v572_v51 = vshrl.u32 %v2875_v39, 16  ;;  %v574_v52 = vshll.u32 %v2875_v39, 16  ;;  %v2561_v14 = vld [vmem:[%s3244_s1 + $0x120] sm:$0xff]  }
  0x21   : > { %2261 = vmatpush3.bf16.msra.mxu0 %v2511_v26  ;;  %v518_v26 = vrot.slane %v2077_v18, 1  ;;  %v463_v33 = vor.u32 %v462_v25, %v458_v16  ;;  %v2562_v15 = vld [vmem:[%s3244_s1 + $0x1a0] sm:$0xff]   ;;  %v2935_v18 = vrot.slane %v567_v38, 1  ;;  %v2969_v38 = vld [vmem:[%s2789_s22 + $0x34] sm:$0x1] }
  0x22   : > { %2301 = vmatpush3.bf16.msra.mxu1 %v2512_v27  ;;  %2262 = vmatprep.subr.bf16.mxu0 %v2513_v28  ;;  %v519_v27 = vrot.slane %v2078_v19, 1  ;;  %v2546_v28 = vld [vmem:[%s3244_s1 + $0x190] sm:$0xff]   ;;  %v2133_v19 = vcombine.low %v326_v44, %v327_v45  ;;  %v2947_v25 = vrot.slane %v574_v52, 1 }
  0x23   : > { %2302 = vmatprep.subr.bf16.mxu1 %v2514_v29  ;;  %v456_v29 = vor.u32 %v455_v23, %v451_v13  ;;  %v2942_v23 = vld [vmem:[%s2789_s22 + $0x2c] sm:$0x1] }
  0x24   : > { %v2126_v34 = vcombine.low %v518_v26, %v519_v27  ;;  %v2565_v26 = vld [vmem:[%s3244_s1 + $0x128] sm:$0xff]  }
  0x25   : > { %2263 = vmatpush3.bf16.msra.mxu0 %v2515_v30  ;;  %v2035_v30 = vld [vmem:[%s2789_s22 + $0x8] sm:$0xe]  ;;  %v2125_v40 = vcombine.low %v456_v29, %v463_v33  ;;  %v2957_v29 = vld [vmem:[%s2789_s22 + $0x30] sm:$0xf]  ;;  %v337_v33 = vld [vmem:[%s2789_s22 + $0x3c] sm:$0x1] }
  0x26   : > { %2303 = vmatpush3.bf16.msra.mxu1 %v2516_v31  ;;  %2328 = vmatprep.subr.bf16.mxu0 %v2527_v49  ;;  %v2036_v31 = vld [vmem:[%s2789_s22 + $0x10] sm:$0xe]  ;;  %v2091_v46 = vcombine.low %v2035_v30, %v2849_v12  ;;  %v335_v49 = vld [vmem:[%s2789_s22 + $0x2c] sm:$0x1]  ;;  %v520_v12 = vrot.slane %v2079_v3, 1 }
  0x27   : > { %2368 = vmatprep.subr.bf16.mxu1 %v2528_v50  ;;  %v2092_v47 = vcombine.low %v2036_v31, %v2028_v22  ;;  %v2894_v50 = vld [vmem:[%s2789_s22 + $0x28] sm:$0xf]  ;;  %v2080_v4 = vcombine.low %v343_v60, %v335_v49  ;;  %v581_v22 = vshll.u32 %v2923_v9, 16  ;;  %v329_v30 = vld [vmem:[%s2789_s22 + $0x38] sm:$0xf] }
  0x28   : > { %1509 = vmatmul.mubr.bf16.vlgmr.msra.gmra.mrb[0].mxu0 %v2115_v57  ;;  %v2905_v57 = vld [vmem:[%s2789_s22 + $0x24] sm:$0x1]  ;;  %v336_v31 = vld [vmem:[%s2789_s22 + $0x34] sm:$0x1]  ;;  %v2993_v3 = vld [vmem:[%s2789_s22 + $0x3c] sm:$0x1] }
  0x29   : > { %1574 = vmatmul.mubr.bf16.vlgmr.msra.gmra.mrb[0].mxu1 %v2117_v62  ;;  %2329 = vmatpush3.bf16.msra.mxu0 %v2529_v55  ;;  %v2072_v55 = vcombine.low %v327_v45, %v335_v49  ;;  %v467_v62 = vshll.u32 %v2071_v54, 16  ;;  %v2913_v2 = vrot.slane %v2092_v47, 1  ;;  %v521_v13 = vrot.slane %v2080_v4, 1  ;;  %v344_v45 = vld [vmem:[%s2789_s22 + $0x30] sm:$0xe] }
  0x2a   : > { %2369 = vmatpush3.bf16.msra.mxu1 %v2530_v56  ;;  %2330 = vmatprep.subr.bf16.mxu0 %v2531_v61  ;;  %v2902_v56 = vld [vmem:[%s2789_s22 + $0x30] sm:$0xf]  ;;  %v465_v61 = vshrl.u32 %v2071_v54, 16  ;;  %v2933_v16 = vcombine.low %v2843_v8, %v2905_v57  ;;  %v2081_v54 = vcombine.low %v344_v45, %v336_v31  ;;  %v2038_v45 = vld [vmem:[%s2789_s22 + $0x20] sm:$0xe] }
  0x2b   : > { %2370 = vmatprep.subr.bf16.mxu1 %v2532_v63  ;;  %1581 = vmatprep.mubr.bf16.mxu1 %v2127_v10  ;;  %v2136_v58 = vcombine.low %v2894_v50, %v2902_v56  ;;  %v472_v63 = vshrl.u32 %v2072_v55, 16  ;;  %v469_v10 = vrot.slane %v467_v62, 1  ;;  %v2576_v62 = vld [vmem:[%s3244_s1 + $0x1f0] sm:$0xff]  }
  0x2c   : > { %1516 = vmatprep.mubr.bf16.mxu0 %v2125_v40  ;;  %v588_v27 = vshll.u32 %v2933_v16, 16  ;;  %v2026_v40 = vld [vmem:[%s2789_s22 + $0x40] sm:$0xf]  ;;  %v586_v59 = vshrl.u32 %v2933_v16, 16  ;;  %v522_v4 = vrot.slane %v2081_v54, 1  ;;  %v3100_v16 = vld [vmem:[%s3244_s1 + $0x210] sm:$0xff]  }
  0x2d   : > { %2331 = vmatpush3.bf16.msra.mxu0 %v2533_v0  ;;  %v474_v0 = vshll.u32 %v2072_v55, 16  ;;  %v470_v7 = vor.u32 %v469_v10, %v465_v61  ;;  %v3068_v54 = vld [vmem:[%s2789_s22 + $0x28] sm:$0xf] }
  0x2e   : > { %2371 = vmatpush3.bf16.msra.mxu1 %v2534_v1  ;;  %2332 = vmatprep.subr.bf16.mxu0 %v2543_v20  ;;  %v2911_v1 = vrot.slane %v2091_v46, 1  ;;  %v2135_v20 = vcombine.low %v520_v12, %v521_v13  ;;  %v345_v46 = vld [vmem:[%s2789_s22 + $0x38] sm:$0xe]  ;;  %v2142_v12 = vcombine.low %v2957_v29, %v329_v30 }
  0x2f   : > { %2372 = vmatprep.subr.bf16.mxu1 %v2544_v21  ;;  %v476_v11 = vrot.slane %v474_v0, 1  ;;  %v2563_v21 = vld [vmem:[%s3244_s1 + $0x168] sm:$0xff]   ;;  %v2082_v55 = vcombine.low %v345_v46, %v337_v33 }
  0x30   : > { %1517 = vmatmul.mubr.bf16.gmra.mrb[4].mxu0 %v2124_v35  ;;  %v2074_v35 = vcombine.low %v329_v30, %v337_v33 }
  0x31   : > { %2333 = vmatpush3.bf16.msra.mxu0 %v2545_v24  ;;  %1582 = vmatmul.mubr.bf16.gmra.mrb[4].mxu1 %v2126_v34  ;;  %v477_v17 = vor.u32 %v476_v11, %v472_v63  ;;  %v2564_v24 = vld [vmem:[%s3244_s1 + $0x1e8] sm:$0xff]   ;;  %v2073_v34 = vcombine.low %v2957_v29, %v336_v31  ;;  %v2577_v63 = vld [vmem:[%s3244_s1 + $0x130] sm:$0xff]   ;;  %v2999_v11 = vld [vmem:[%s2789_s22 + $0x44] sm:$0x1] }
  0x32   : > { %2373 = vmatpush3.bf16.msra.mxu1 %v2546_v28  ;;  %2334 = vmatprep.subr.bf16.mxu0 %v2547_v36  ;;  %v2566_v28 = vld [vmem:[%s3244_s1 + $0x1a8] sm:$0xff]   ;;  %v2025_v36 = vld [vmem:[%s2789_s22 + $0x38] sm:$0xf]  ;;  %v486_v49 = vshrl.u32 %v2074_v35, 16  ;;  %v488_v52 = vshll.u32 %v2074_v35, 16  ;;  %v3039_v30 = vcombine.low %v2026_v40, %v2999_v11 }
  0x33   : > { %2374 = vmatprep.subr.bf16.mxu1 %v2548_v37  ;;  %1589 = vmatprep.mubr.bf16.mxu1 %v2136_v58  ;;  %v2134_v8 = vcombine.low %v470_v7, %v477_v17  ;;  %v579_v37 = vshrl.u32 %v2923_v9, 16  ;;  %v2145_v44 = vcombine.low %v2025_v36, %v2026_v40  ;;  %v479_v47 = vshrl.u32 %v2073_v34, 16  ;;  %v2575_v58 = vld [vmem:[%s3244_s1 + $0x170] sm:$0xff]  }
  0x34   : > { %v481_v48 = vshll.u32 %v2073_v34, 16  ;;  %v490_v61 = vrot.slane %v488_v52, 1  ;;  %v3036_v29 = vld [vmem:[%s2789_s22 + $0x14] sm:$0x1]  ;;  %v2037_v34 = vld [vmem:[%s2789_s22 + $0x18] sm:$0xe]  ;;  %v2094_v52 = vcombine.low %v2038_v45, %v2905_v57 }
  0x35   : > { %2335 = vmatpush3.bf16.msra.mxu0 %v2549_v42  ;;  %1524 = vmatprep.mubr.bf16.mxu0 %v2134_v8  ;;  %v2966_v42 = vrot.slane %v581_v22, 1  ;;  %v3016_v8 = vcombine.low %v2025_v36, %v2993_v3  ;;  %v2093_v46 = vcombine.low %v2037_v34, %v2899_v53  ;;  %v3079_v53 = vld [vmem:[%s3244_s1 + $0x208] sm:$0xff]   ;;  %v2042_v45 = vld [vmem:[%s2789_s22 + $0x40] sm:$0xe] }
  0x36   : > { %2375 = vmatpush3.bf16.msra.mxu1 %v2550_v43  ;;  %2336 = vmatprep.subr.bf16.mxu0 %v2559_v5  ;;  %v2973_v43 = vcombine.low %v2894_v50, %v2942_v23  ;;  %v2983_v50 = vcombine.low %v2902_v56, %v2969_v38  ;;  %v483_v60 = vrot.slane %v481_v48, 1  ;;  %v523_v5 = vrot.slane %v2082_v55, 1  ;;  %v2578_v56 = vld [vmem:[%s3244_s1 + $0x1b0] sm:$0xff]   ;;  %v3071_v55 = vld [vmem:[%s2789_s22 + $0x24] sm:$0x1] }
  0x37   : > { %2376 = vmatprep.subr.bf16.mxu1 %v2560_v6  ;;  %v491_v10 = vor.u32 %v490_v61, %v486_v49  ;;  %v616_v48 = vshll.u32 %v3039_v30, 16  ;;  %v646_v61 = vrot.slane %v2093_v46, 1 }
  0x38   : > { %1525 = vmatmul.mubr.bf16.gmra.mrb[8].mxu0 %v2133_v19  ;;  %v595_v0 = vshll.u32 %v2973_v43, 16  ;;  %v484_v6 = vor.u32 %v483_v60, %v479_v47  ;;  %v2144_v13 = vcombine.low %v522_v4, %v523_v5  ;;  %v602_v7 = vshll.u32 %v2983_v50, 16  ;;  %v2580_v19 = vld [vmem:[%s3244_s1 + $0x1f8] sm:$0xff]   ;;  %v3063_v47 = vld [vmem:[%s2789_s22 + $0x20] sm:$0xf] }
  0x39   : > { %2337 = vmatpush3.bf16.msra.mxu0 %v2561_v14  ;;  %1590 = vmatmul.mubr.bf16.gmra.mrb[8].mxu1 %v2135_v20  ;;  %v2579_v14 = vld [vmem:[%s3244_s1 + $0x178] sm:$0xff]   ;;  %v593_v22 = vshrl.u32 %v2973_v43, 16  ;;  %v2101_v57 = vcombine.low %v3063_v47, %v3071_v55  ;;  %v647_v4 = vrot.slane %v2094_v52, 1 }
  0x3a   : > { %2377 = vmatpush3.bf16.msra.mxu1 %v2562_v15  ;;  %2338 = vmatprep.subr.bf16.mxu0 %v2563_v21  ;;  %v590_v15 = vrot.slane %v588_v27, 1  ;;  %v2143_v17 = vcombine.low %v484_v6, %v491_v10  ;;  %v2581_v20 = vld [vmem:[%s3244_s1 + $0x138] sm:$0xff]   ;;  %v2120_v21 = vcombine.low %v2911_v1, %v2913_v2  ;;  %v570_v27 = vor.u32 %v2935_v18, %v565_v41  ;;  %v3030_v2 = vld [vmem:[%s2789_s22 + $0x10] sm:$0xf] }
  0x3b   : > { %2378 = vmatprep.subr.bf16.mxu1 %v2564_v24  ;;  %1597 = vmatprep.mubr.bf16.mxu1 %v2145_v44  ;;  %v2582_v24 = vld [vmem:[%s3244_s1 + $0x1b8] sm:$0xff]   ;;  %v577_v1 = vor.u32 %v2947_v25, %v572_v51  ;;  %v2099_v39 = vcombine.low %v3030_v2, %v3036_v29  ;;  %v3051_v51 = vld [vmem:[%s3244_s1 + $0x200] sm:$0xff]   ;;  %v600_v18 = vshrl.u32 %v2983_v50, 16  ;;  %v609_v25 = vshll.u32 %v3016_v8, 16 }
  0x3c   : > { %1532 = vmatprep.mubr.bf16.mxu0 %v2143_v17  ;;  %v3056_v35 = vrot.slane %v602_v7, 1  ;;  %v707_v5 = vshrl.u32 %v2101_v57, 16  ;;  %v591_v6 = vor.u32 %v590_v15, %v586_v59  ;;  %v2039_v59 = vld [vmem:[%s2789_s22 + $0x28] sm:$0xe]  ;;  %v2040_v15 = vld [vmem:[%s2789_s22 + $0x30] sm:$0xe] }
  0x3d   : > { %2339 = vmatpush3.bf16.msra.mxu0 %v2565_v26  ;;  %v3021_v26 = vrot.slane %v595_v0, 1  ;;  %v693_v31 = vshrl.u32 %v2099_v39, 16  ;;  %v695_v33 = vshll.u32 %v2099_v39, 16  ;;  %v2119_v36 = vcombine.low %v570_v27, %v577_v1  ;;  %v3110_v27 = vld [vmem:[%s2789_s22 + $0x38] sm:$0xf] }
  0x3e   : > { %2379 = vmatpush3.bf16.msra.mxu1 %v2566_v28  ;;  %2340 = vmatprep.subr.bf16.mxu0 %v2575_v58  ;;  %v3033_v28 = vld [vmem:[%s2789_s22 + $0x18] sm:$0xf]  ;;  %v584_v58 = vor.u32 %v2966_v42, %v579_v37  ;;  %v3089_v37 = vrot.slane %v609_v25, 1  ;;  %v614_v1 = vshrl.u32 %v3039_v30, 16 }
  0x3f   : > { %2380 = vmatprep.subr.bf16.mxu1 %v2576_v62  ;;  %v2100_v41 = vcombine.low %v3033_v28, %v3042_v32  ;;  %v697_v49 = vrot.slane %v695_v33, 1  ;;  %v3082_v62 = vld [vmem:[%s2789_s22 + $0x2c] sm:$0x1]  ;;  %v2121_v10 = vcombine.low %v3030_v2, %v3033_v28  ;;  %v3116_v39 = vld [vmem:[%s3244_s1 + $0x218] sm:$0xff]  }
  0x40   : > { %1533 = vmatmul.mubr.bf16.gmra.mrb[12].mxu0 %v2142_v12  ;;  %v2102_v9 = vcombine.low %v3068_v54, %v3082_v62  ;;  %v2129_v12 = vcombine.low %v646_v61, %v647_v4  ;;  %v2128_v28 = vcombine.low %v584_v58, %v591_v6  ;;  %v3141_v58 = vld [vmem:[%s2789_s22 + $0x40] sm:$0xf]  ;;  %v2130_v61 = vcombine.low %v3063_v47, %v3068_v54 }
  0x41   : > { %2341 = vmatpush3.bf16.msra.mxu0 %v2577_v63  ;;  %1598 = vmatmul.mubr.bf16.gmra.mrb[12].mxu1 %v2144_v13  ;;  %v700_v40 = vshrl.u32 %v2100_v41, 16  ;;  %v702_v44 = vshll.u32 %v2100_v41, 16  ;;  %v607_v63 = vshrl.u32 %v3016_v8, 16  ;;  %v698_v0 = vor.u32 %v697_v49, %v693_v31  ;;  %v3119_v41 = vld [vmem:[%s2789_s22 + $0x34] sm:$0x1] }
  0x42   : > { %2381 = vmatpush3.bf16.msra.mxu1 %v2578_v56  ;;  %2342 = vmatprep.subr.bf16.mxu0 %v2579_v14  ;;  %v709_v56 = vshll.u32 %v2101_v57, 16  ;;  %v714_v13 = vshrl.u32 %v2102_v9, 16  ;;  %v716_v14 = vshll.u32 %v2102_v9, 16 }
  0x43   : > { %2382 = vmatprep.subr.bf16.mxu1 %v2580_v19  ;;  %1638 = vmatprep.mubr.bf16.mxu0 %v2120_v21  ;;  %v704_v60 = vrot.slane %v702_v44, 1  ;;  %v2096_v21 = vcombine.low %v2040_v15, %v2969_v38  ;;  %v2041_v44 = vld [vmem:[%s2789_s22 + $0x38] sm:$0xe] }
  0x44   : > { %v711_v17 = vrot.slane %v709_v56, 1  ;;  %v718_v19 = vrot.slane %v716_v14, 1  ;;  %v2097_v50 = vcombine.low %v2041_v44, %v2993_v3 }
  0x45   : > { %2343 = vmatpush3.bf16.msra.mxu0 %v2581_v20  ;;  %v705_v42 = vor.u32 %v704_v60, %v700_v40  ;;  %v2095_v20 = vcombine.low %v2039_v59, %v2942_v23  ;;  %v3122_v23 = vld [vmem:[%s2789_s22 + $0x3c] sm:$0x1]  ;;  %v649_v31 = vrot.slane %v2096_v21, 1  ;;  %v605_v40 = vor.u32 %v3056_v35, %v600_v18  ;;  %v3144_v60 = vld [vmem:[%s2789_s22 + $0x48] sm:$0xf] }
  0x46   : > { %2383 = vmatpush3.bf16.msra.mxu1 %v2582_v24  ;;  %2420 = vmatprep.subr.bf16.mxu0 %v3051_v51  ;;  %v3107_v24 = vld [vmem:[%s2789_s22 + $0x30] sm:$0xf]  ;;  %v712_v2 = vor.u32 %v711_v17, %v707_v5  ;;  %v719_v38 = vor.u32 %v718_v19, %v714_v13  ;;  %v2104_v34 = vcombine.low %v3110_v27, %v3122_v23  ;;  %v3149_v18 = vld [vmem:[%s2789_s22 + $0x44] sm:$0x1]  ;;  %v3152_v35 = vld [vmem:[%s2789_s22 + $0x4c] sm:$0x1] }
  0x47   : > { %2444 = vmatprep.subr.bf16.mxu1 %v3051_v51  ;;  %v2122_v7 = vcombine.low %v698_v0, %v705_v42  ;;  %v648_v25 = vrot.slane %v2095_v20, 1  ;;  %v2103_v33 = vcombine.low %v3107_v24, %v3119_v41  ;;  %v2105_v0 = vcombine.low %v3141_v58, %v3149_v18  ;;  %v2060_v17 = vld [vmem:[%s2789_s22 + $0x18] sm:$0xe] }
  0x48   : > { %1639 = vmatmul.mubr.bf16.vlgmr.msra.gmra.mrb[16].mxu0 %v2119_v36  ;;  %v598_v36 = vor.u32 %v3021_v26, %v593_v22  ;;  %v728_v43 = vshrl.u32 %v2104_v34, 16  ;;  %v730_v22 = vshll.u32 %v2104_v34, 16  ;;  %v2098_v26 = vcombine.low %v2042_v45, %v2999_v11  ;;  %v2602_v11 = vld [vmem:[%s3244_s1 + $0x220] sm:$0xff]  }
  0x49   : > { %2421 = vmatpush3.bf16.msra.mxu0 %v3051_v51  ;;  %1646 = vmatprep.mubr.bf16.mxu0 %v2129_v12  ;;  %v2138_v46 = vcombine.low %v648_v25, %v649_v31  ;;  %v721_v49 = vshrl.u32 %v2103_v33, 16  ;;  %v723_v52 = vshll.u32 %v2103_v33, 16  ;;  %v2106_v4 = vcombine.low %v3144_v60, %v3152_v35  ;;  %v2061_v31 = vld [vmem:[%s2789_s22 + $0x20] sm:$0xe]  ;;  %v2062_v33 = vld [vmem:[%s2789_s22 + $0x28] sm:$0xe] }
  0x4a   : > { %2422 = vmatprep.subr.bf16.mxu0 %v3079_v53  ;;  %1703 = vmatprep.mubr.bf16.mxu1 %v2122_v7  ;;  %v732_v3 = vrot.slane %v730_v22, 1  ;;  %v650_v9 = vrot.slane %v2097_v50, 1  ;;  %v651_v47 = vrot.slane %v2098_v26, 1  ;;  %v735_v42 = vshrl.u32 %v2105_v0, 16  ;;  %v2059_v7 = vld [vmem:[%s2789_s22 + $0x10] sm:$0xe] }
  0x4b   : > { %1704 = vmatmul.mubr.bf16.vlgmr.msra.gmra.mrb[16].mxu1 %v2121_v10  ;;  %v725_v57 = vrot.slane %v723_v52, 1  ;;  %v737_v5 = vshll.u32 %v2105_v0, 16  ;;  %v2137_v6 = vcombine.low %v598_v36, %v605_v40  ;;  %v742_v10 = vshrl.u32 %v2106_v4, 16  ;;  %v2065_v36 = vld [vmem:[%s2789_s22 + $0x40] sm:$0xe] }
  0x4c   : > { %2452 = vmatpush3.bf16.msra.mxu1 %v3051_v51  ;;  %v2131_v51 = vcombine.low %v712_v2, %v719_v38  ;;  %v733_v56 = vor.u32 %v732_v3, %v728_v43  ;;  %v744_v12 = vshll.u32 %v2106_v4, 16  ;;  %v2147_v13 = vcombine.low %v650_v9, %v651_v47  ;;  %v2063_v2 = vld [vmem:[%s2789_s22 + $0x30] sm:$0xe]  ;;  %v2066_v40 = vld [vmem:[%s2789_s22 + $0x48] sm:$0xe] }
  0x4d   : > { %2423 = vmatpush3.bf16.msra.mxu0 %v3079_v53  ;;  %2445 = vmatprep.subr.bf16.mxu1 %v3079_v53  ;;  %v726_v54 = vor.u32 %v725_v57, %v721_v49  ;;  %v739_v14 = vrot.slane %v737_v5, 1  ;;  %v2107_v19 = vcombine.low %v2059_v7, %v3036_v29  ;;  %v2108_v21 = vcombine.low %v2060_v17, %v3042_v32 }
  0x4e   : > { %2424 = vmatprep.subr.bf16.mxu0 %v3100_v16  ;;  %1711 = vmatprep.mubr.bf16.mxu1 %v2131_v51  ;;  %v746_v15 = vrot.slane %v744_v12, 1  ;;  %v612_v38 = vor.u32 %v3089_v37, %v607_v63  ;;  %v2139_v29 = vcombine.low %v3107_v24, %v3110_v27  ;;  %v2111_v63 = vcombine.low %v2063_v2, %v3119_v41  ;;  %v2611_v37 = vld [vmem:[%s3244_s1 + $0x230] sm:$0xff]   ;;  %v2612_v41 = vld [vmem:[%s3244_s1 + $0x238] sm:$0xff]  }
  0x4f   : > { %v2140_v59 = vcombine.low %v726_v54, %v733_v56  ;;  %v740_v20 = vor.u32 %v739_v14, %v735_v42  ;;  %v772_v32 = vrot.slane %v2107_v19, 1  ;;  %v773_v34 = vrot.slane %v2108_v21, 1 }
  0x50   : > { %1647 = vmatmul.mubr.bf16.gmra.mrb[20].mxu0 %v2128_v28  ;;  %2453 = vmatpush3.bf16.msra.mxu1 %v3079_v53  ;;  %v618_v53 = vrot.slane %v616_v48, 1  ;;  %v2603_v48 = vld [vmem:[%s3244_s1 + $0x228] sm:$0xff]   ;;  %v2064_v28 = vld [vmem:[%s2789_s22 + $0x38] sm:$0xe]  ;;  %v2109_v24 = vcombine.low %v2061_v31, %v3071_v55  ;;  %v2110_v27 = vcombine.low %v2062_v33, %v3082_v62  ;;  %v2113_v62 = vcombine.low %v2065_v36, %v3149_v18  ;;  %s2227_s22 = sshll.u32 %s3254_s18, 5 }
  0x51   : > { %2425 = vmatpush3.bf16.msra.mxu0 %v3100_v16  ;;  %2446 = vmatprep.subr.bf16.mxu1 %v3100_v16  ;;  %v2112_v30 = vcombine.low %v2064_v28, %v3122_v23  ;;  %v776_v23 = vrot.slane %v2111_v63, 1  ;;  %v2114_v51 = vcombine.low %v2066_v40, %v3152_v35  ;;  %s312_s29 = scalar_lea.vmem %s3247_s4, %s2227_s22 }
  0x52   : > { %2426 = vmatprep.subr.bf16.mxu0 %v3116_v39  ;;  %1654 = vmatprep.mubr.bf16.mxu0 %v2138_v46  ;;  %v619_v25 = vor.u32 %v618_v53, %v614_v1  ;;  %v774_v45 = vrot.slane %v2109_v24, 1  ;;  %v775_v55 = vrot.slane %v2110_v27, 1  ;;  %v2148_v46 = vcombine.low %v3141_v58, %v3144_v60 }
  0x53   : > { %1712 = vmatmul.mubr.bf16.gmra.mrb[20].mxu1 %v2130_v61  ;;  %v777_v44 = vrot.slane %v2112_v30, 1  ;;  %v778_v43 = vrot.slane %v2113_v62, 1  ;;  %v779_v22 = vrot.slane %v2114_v51, 1 }
  0x54   : > { %2454 = vmatpush3.bf16.msra.mxu1 %v3100_v16  ;;  %1719 = vmatprep.mubr.bf16.mxu1 %v2140_v59  ;;  %v747_v16 = vor.u32 %v746_v15, %v742_v10  ;;  %v2146_v1 = vcombine.low %v612_v38, %v619_v25  ;;  %v2132_v52 = vcombine.low %v774_v45, %v775_v55 }
  0x55   : > { %2427 = vmatpush3.bf16.msra.mxu0 %v3116_v39  ;;  %2447 = vmatprep.subr.bf16.mxu1 %v3116_v39  ;;  %v2141_v49 = vcombine.low %v776_v23, %v777_v44  ;;  %v2150_v50 = vcombine.low %v778_v43, %v779_v22 }
  0x56   : > { %2428 = vmatprep.subr.bf16.mxu0 %v2602_v11  ;;  %v2149_v8 = vcombine.low %v740_v20, %v747_v16 }
  0x58   : > { %1655 = vmatmul.mubr.bf16.gmra.mrb[24].mxu0 %v2137_v6  ;;  %2455 = vmatpush3.bf16.msra.mxu1 %v3116_v39  ;;  %v2123_v39 = vcombine.low %v772_v32, %v773_v34 }
  0x59   : > { %2429 = vmatpush3.bf16.msra.mxu0 %v2602_v11  ;;  %1662 = vmatprep.mubr.bf16.mxu0 %v2147_v13 }
  0x5a   : > { %2430 = vmatprep.subr.bf16.mxu0 %v2603_v48  ;;  %2448 = vmatprep.subr.bf16.mxu1 %v2602_v11 }
  0x5b   : > { %1720 = vmatmul.mubr.bf16.gmra.mrb[24].mxu1 %v2139_v29 }
  0x5c   : > { %2456 = vmatpush3.bf16.msra.mxu1 %v2602_v11  ;;  %1727 = vmatprep.mubr.bf16.mxu1 %v2149_v8 }
  0x5d   : > { %2431 = vmatpush3.bf16.msra.mxu0 %v2603_v48  ;;  %2449 = vmatprep.subr.bf16.mxu1 %v2603_v48 }
  0x5e   : > { %2432 = vmatprep.subr.bf16.mxu0 %v2611_v37 }
  0x60   : > { %1663 = vmatmul.mubr.bf16.gmra.mrb[28].mxu0 %v2146_v1  ;;  %2457 = vmatpush3.bf16.msra.mxu1 %v2603_v48 }
  0x61   : > { %2433 = vmatpush3.bf16.msra.mxu0 %v2611_v37  ;;  %2436 = vmatprep.mubr.bf16.mxu0 %v2123_v39 }
  0x62   : > { %2434 = vmatprep.subr.bf16.mxu0 %v2612_v41  ;;  %2450 = vmatprep.subr.bf16.mxu1 %v2611_v37 }
  0x63   : > { %1728 = vmatmul.mubr.bf16.gmra.mrb[28].mxu1 %v2148_v46 }
  0x64   : > { %2458 = vmatpush3.bf16.msra.mxu1 %v2611_v37  ;;  %2440 = vmatprep.mubr.bf16.mxu1 %v2141_v49 }
  0x65   : > { %2435 = vmatpush3.bf16.msra.mxu0 %v2612_v41  ;;  %2451 = vmatprep.subr.bf16.mxu1 %v2612_v41 }
  0x68   : > { %2437 = vmatmul.mubr.bf16.vlgmr.msra.gmra.mrb[32].mxu0 %v2132_v52  ;;  %2459 = vmatpush3.bf16.msra.mxu1 %v2612_v41 }
  0x6b   : > { %2441 = vmatmul.mubr.bf16.vlgmr.msra.gmra.mrb[32].mxu1 %v2150_v50 }
  0xfb   : > { %v2264_v26 = vpop.f32.mrb[0].mxu0 }
  0xfc   : > { %v2304_v58 = vpop.f32.mrb[0].mxu1  ;;  %v2265_v60 = vpop.f32.mrb[1].mxu0 }
  0xfd   : > { %v2305_v18 = vpop.f32.mrb[1].mxu1  ;;  %v2266_v35 = vadd.f32 %v2265_v60, %v2264_v26  ;;  %v2267_v57 = vpop.f32.mrb[2].mxu0 }
  0xfe   : > { %v2306_v61 = vadd.f32 %v2305_v18, %v2304_v58  ;;  %v2307_v0 = vpop.f32.mrb[2].mxu1  ;;  %v2268_v4 = vpop.f32.mrb[3].mxu0 }
  0xff   : > { %v2308_v3 = vpop.f32.mrb[3].mxu1  ;;  %v2269_v9 = vadd.f32 %v2268_v4, %v2267_v57 }
 0x100   : > { %v1576_v11 = vadd.f32 %v2306_v61, %v2266_v35  ;;  %v2309_v47 = vadd.f32 %v2308_v3, %v2307_v0 }
 0x102   : > { %v1579_v54 = vadd.f32 %v2309_v47, %v2269_v9 }
 0x103   : > { %v2270_v6 = vpop.f32.mrb[4].mxu0 }
 0x104   : > { %v2310_v42 = vpop.f32.mrb[4].mxu1  ;;  %v2271_v12 = vpop.f32.mrb[5].mxu0 }
 0x105   : > { %v2311_v5 = vpop.f32.mrb[5].mxu1  ;;  %v2272_v14 = vadd.f32 %v2271_v12, %v2270_v6  ;;  %v2273_v7 = vpop.f32.mrb[6].mxu0 }
 0x106   : > { %v2312_v53 = vadd.f32 %v2311_v5, %v2310_v42  ;;  %v2313_v56 = vpop.f32.mrb[6].mxu1  ;;  %v2274_v17 = vpop.f32.mrb[7].mxu0 }
 0x107   : > { %v2314_v10 = vpop.f32.mrb[7].mxu1  ;;  %v2275_v48 = vadd.f32 %v2274_v17, %v2273_v7 }
 0x108   : > { %v2315_v13 = vadd.f32 %v2314_v10, %v2313_v56  ;;  %v1584_v59 = vadd.f32 %v2312_v53, %v2272_v14 }
 0x10a   : > { %v1587_v15 = vadd.f32 %v2315_v13, %v2275_v48 }
 0x10b   : > { %v2276_v21 = vpop.f32.mrb[8].mxu0 }
 0x10c   : > { %v2316_v19 = vpop.f32.mrb[8].mxu1  ;;  %v2277_v16 = vpop.f32.mrb[9].mxu0 }
 0x10d   : > { %v2317_v20 = vpop.f32.mrb[9].mxu1  ;;  %v2278_v25 = vadd.f32 %v2277_v16, %v2276_v21  ;;  %v2279_v31 = vpop.f32.mrb[10].mxu0 }
 0x10e   : > { %v2318_v2 = vadd.f32 %v2317_v20, %v2316_v19  ;;  %v2319_v28 = vpop.f32.mrb[10].mxu1  ;;  %v2280_v29 = vpop.f32.mrb[11].mxu0 }
 0x10f   : > { %v2320_v38 = vpop.f32.mrb[11].mxu1  ;;  %v2281_v34 = vadd.f32 %v2280_v29, %v2279_v31 }
 0x110   : > { %v2321_v33 = vadd.f32 %v2320_v38, %v2319_v28  ;;  %v1592_v32 = vadd.f32 %v2318_v2, %v2278_v25 }
 0x112   : > { %v1595_v8 = vadd.f32 %v2321_v33, %v2281_v34 }
 0x113   : > { %v2282_v37 = vpop.f32.mrb[12].mxu0 }
 0x114   : > { %v2322_v63 = vpop.f32.mrb[12].mxu1  ;;  %v2283_v1 = vpop.f32.mrb[13].mxu0 }
 0x115   : > { %v2323_v30 = vpop.f32.mrb[13].mxu1  ;;  %v2284_v39 = vadd.f32 %v2283_v1, %v2282_v37  ;;  %v2285_v40 = vpop.f32.mrb[14].mxu0 }
 0x116   : > { %v2324_v24 = vadd.f32 %v2323_v30, %v2322_v63  ;;  %v2325_v27 = vpop.f32.mrb[14].mxu1  ;;  %v2286_v23 = vpop.f32.mrb[15].mxu0 }
 0x117   : > { %v2326_v36 = vpop.f32.mrb[15].mxu1  ;;  %v2287_v45 = vadd.f32 %v2286_v23, %v2285_v40 }
 0x118   : > { %v2327_v41 = vadd.f32 %v2326_v36, %v2325_v27  ;;  %v1600_v44 = vadd.f32 %v2324_v24, %v2284_v39 }
 0x11a   : > { %v1603_v55 = vadd.f32 %v2327_v41, %v2287_v45 }
 0x11b   : > { %v2344_v62 = vpop.f32.mrb[16].mxu0 }
 0x11c   : > { %v2345_v51 = vpop.f32.mrb[17].mxu0 }
 0x11d   : > { %v2346_v46 = vadd.f32 %v2345_v51, %v2344_v62  ;;  %v2347_v49 = vpop.f32.mrb[18].mxu0  ;;  %v2223_v62 = vld [vmem:[%s3245_s2] ss:$0 sm:$0xff]  ;;  %v2245_v51 = vld [vmem:[%s312_s29 + $0x8] sm:$0xff]  }
 0x11e   : > { %v2348_v52 = vpop.f32.mrb[19].mxu0  ;;  %v2384_v50 = vpop.f32.mrb[16].mxu1 }
 0x11f   : > { %v1641_v43 = vadd.f32 %v2346_v46, %v1576_v11  ;;  %v2349_v22 = vadd.f32 %v2348_v52, %v2347_v49  ;;  %v2385_v26 = vpop.f32.mrb[17].mxu1  ;;  %v2247_v52 = vld [vmem:[%s312_s29 + $0x18] sm:$0xff]  }
 0x120   : > { %v2386_v60 = vadd.f32 %v2385_v26, %v2384_v50  ;;  %v2387_v18 = vpop.f32.mrb[18].mxu1  ;;  %v2246_v26 = vld [vmem:[%s312_s29 + $0x10] sm:$0xff]  }
 0x121   : > { %v1644_v58 = vadd.f32 %v2349_v22, %v1579_v54  ;;  %v2388_v35 = vpop.f32.mrb[19].mxu1  ;;  %v2230_v22 = vld [vmem:[%s312_s29] sm:$0xff]  }
 0x122   : > { %v2389_v57 = vadd.f32 %v2388_v35, %v2387_v18  ;;  %v1706_v4 = vadd.f32 %v2386_v60, %v1641_v43  ;;  %v2235_v18 = vunpack.c.l.bf16 %v2245_v51 }
 0x123   : > { %v2350_v61 = vpop.f32.mrb[20].mxu0 }
 0x124   : > { %v2351_v0 = vpop.f32.mrb[21].mxu0  ;;  %v3207_v42 = vadd.f32 %v2389_v57, %v1644_v58 }
 0x125   : > { %v2352_v3 = vadd.f32 %v2351_v0, %v2350_v61  ;;  %v2353_v9 = vpop.f32.mrb[22].mxu0  ;;  %v2243_v0 = vunpack.c.l.bf16 %v2247_v52 }
 0x126   : > { %v2354_v47 = vpop.f32.mrb[23].mxu0  ;;  %v2390_v56 = vpop.f32.mrb[20].mxu1 }
 0x127   : > { %v1649_v5 = vadd.f32 %v2352_v3, %v1584_v59  ;;  %v2355_v53 = vadd.f32 %v2354_v47, %v2353_v9  ;;  %v2391_v11 = vpop.f32.mrb[21].mxu1  ;;  %v2231_v9 = vunpack.c.l.bf16 %v2230_v22 }
 0x128   : > { %v2392_v10 = vadd.f32 %v2391_v11, %v2390_v56  ;;  %v2393_v12 = vpop.f32.mrb[22].mxu1  ;;  %v2239_v56 = vunpack.c.l.bf16 %v2246_v26 }
 0x129   : > { %v1652_v6 = vadd.f32 %v2355_v53, %v1587_v15  ;;  %v2394_v54 = vpop.f32.mrb[23].mxu1 }
 0x12a   : > { %v2395_v14 = vadd.f32 %v2394_v54, %v2393_v12  ;;  %v1714_v17 = vadd.f32 %v2392_v10, %v1649_v5 }
 0x12b   : > { %v2356_v13 = vpop.f32.mrb[24].mxu0 }
 0x12c   : > { %v2357_v7 = vpop.f32.mrb[25].mxu0  ;;  %v1717_v21 = vadd.f32 %v2395_v14, %v1652_v6  ;;  %v2236_v6 = vunpack.c.h.bf16 %v2245_v51 }
 0x12d   : > { %v2358_v48 = vadd.f32 %v2357_v7, %v2356_v13  ;;  %v2359_v19 = vpop.f32.mrb[26].mxu0  ;;  %v2232_v13 = vunpack.c.h.bf16 %v2230_v22 }
 0x12e   : > { %v2360_v20 = vpop.f32.mrb[27].mxu0  ;;  %v2396_v16 = vpop.f32.mrb[24].mxu1 }
 0x12f   : > { %v1657_v2 = vadd.f32 %v2358_v48, %v1592_v32  ;;  %v2361_v28 = vadd.f32 %v2360_v20, %v2359_v19  ;;  %v2397_v59 = vpop.f32.mrb[25].mxu1  ;;  %v2244_v19 = vunpack.c.h.bf16 %v2247_v52 }
 0x130   : > { %v2398_v25 = vadd.f32 %v2397_v59, %v2396_v16  ;;  %v2399_v31 = vpop.f32.mrb[26].mxu1 }
 0x131   : > { %v1660_v38 = vadd.f32 %v2361_v28, %v1595_v8  ;;  %v2400_v15 = vpop.f32.mrb[27].mxu1 }
 0x132   : > { %v2401_v29 = vadd.f32 %v2400_v15, %v2399_v31  ;;  %v1722_v63 = vadd.f32 %v2398_v25, %v1657_v2 }
 0x133   : > { %v2362_v33 = vpop.f32.mrb[28].mxu0 }
 0x134   : > { %v2363_v34 = vpop.f32.mrb[29].mxu0  ;;  %v1725_v27 = vadd.f32 %v2401_v29, %v1660_v38 }
 0x135   : > { %v2364_v30 = vadd.f32 %v2363_v34, %v2362_v33  ;;  %v2365_v37 = vpop.f32.mrb[30].mxu0 }
 0x136   : > { %v2366_v24 = vpop.f32.mrb[31].mxu0  ;;  %v2402_v39 = vpop.f32.mrb[28].mxu1 }
 0x137   : > { %v1665_v1 = vadd.f32 %v2364_v30, %v1600_v44  ;;  %v2367_v36 = vadd.f32 %v2366_v24, %v2365_v37  ;;  %v2403_v32 = vpop.f32.mrb[29].mxu1  ;;  %v2240_v37 = vunpack.c.h.bf16 %v2246_v26 }
 0x138   : > { %v2404_v40 = vadd.f32 %v2403_v32, %v2402_v39  ;;  %v2405_v41 = vpop.f32.mrb[30].mxu1 }
 0x139   : > { %v1668_v8 = vadd.f32 %v2367_v36, %v1603_v55  ;;  %v2406_v23 = vpop.f32.mrb[31].mxu1  ;;  %v2224_v55 = vld [vmem:[%s3246_s3] ss:$0 sm:$0xff] }
 0x13a   : > { %v2407_v46 = vadd.f32 %v2406_v23, %v2405_v41  ;;  %v1730_v44 = vadd.f32 %v2404_v40, %v1665_v1 }
 0x13b   : > { %v2438_v45 = vpop.f32.mrb[32].mxu0 }
 0x13c   : > { %v1779_v49 = vadd.f32 %v2438_v45, %v1714_v17  ;;  %v1770_v43 = vpop.f32.mrb[33].mxu0  ;;  %v1733_v61 = vadd.f32 %v2407_v46, %v1668_v8 }
 0x13d   : > { %v1771_v50 = vadd.f32 %v1770_v43, %v1706_v4  ;;  %v2439_v58 = vpop.f32.mrb[34].mxu0 }
 0x13e   : > { %v1810_v60 = vmul.f32 %v2223_v62, %v1779_v49  ;;  %v1782_v35 = vadd.f32 %v2439_v58, %v1717_v21  ;;  %v1773_v57 = vpop.f32.mrb[35].mxu0  ;;  %v2442_v53 = vpop.f32.mrb[32].mxu1 }
 0x13f   : > { %v1808_v3 = vmul.f32 %v2223_v62, %v1771_v50  ;;  %v1774_v47 = vadd.f32 %v1773_v57, %v3207_v42  ;;  %v1795_v10 = vadd.f32 %v2442_v53, %v1730_v44  ;;  %v1786_v12 = vpop.f32.mrb[33].mxu1 }
 0x140   : > { %v1825_v5 = vadd.f32 %v2224_v55, %v1810_v60  ;;  %v1811_v11 = vmul.f32 %v2223_v62, %v1782_v35  ;;  %v1787_v7 = vadd.f32 %v1786_v12, %v1722_v63  ;;  %v2443_v48 = vpop.f32.mrb[34].mxu1 }
 0x141   : > { %v1823_v4 = vadd.f32 %v2224_v55, %v1808_v3  ;;  %v1809_v54 = vmul.f32 %v2223_v62, %v1774_v47  ;;  %v1814_v42 = vmul.f32 %v2223_v62, %v1795_v10  ;;  %v1798_v21 = vadd.f32 %v2443_v48, %v1733_v61  ;;  %v1789_v28 = vpop.f32.mrb[35].mxu1 }
 0x142   : > { %v1849_v14 = vadd.f32 %v2235_v18, %v1825_v5  ;;  %v1826_v17 = vadd.f32 %v2224_v55, %v1811_v11  ;;  %v1812_v59 = vmul.f32 %v2223_v62, %v1787_v7  ;;  %v1790_v25 = vadd.f32 %v1789_v28, %v1725_v27 }
 0x143   : > { %v1847_v20 = vadd.f32 %v2231_v9, %v1823_v4  ;;  %v1824_v2 = vadd.f32 %v2224_v55, %v1809_v54  ;;  %v1829_v31 = vadd.f32 %v2224_v55, %v1814_v42  ;;  %v1815_v33 = vmul.f32 %v2223_v62, %v1798_v21 }
 0x144   : > { %v1857_v16 = vmax.f32 %v1849_v14, 0.0  ;;  %v1850_v38 = vadd.f32 %v2236_v6, %v1826_v17  ;;  %v1827_v34 = vadd.f32 %v2224_v55, %v1812_v59  ;;  %v1813_v30 = vmul.f32 %v2223_v62, %v1790_v25 }
 0x145   : > { %v1855_v15 = vmax.f32 %v1847_v20, 0.0  ;;  %v1848_v29 = vadd.f32 %v2232_v13, %v1824_v2  ;;  %v1853_v24 = vadd.f32 %v2243_v0, %v1829_v31  ;;  %v1830_v1 = vadd.f32 %v2224_v55, %v1815_v33 }
 0x146   : > { %1865 = vst [vmem:[%s3224_s12 + $0x10] sm:$0xff] %v1857_v16  ;;  %v1858_v63 = vmax.f32 %v1850_v38, 0.0  ;;  %v1851_v39 = vadd.f32 %v2239_v56, %v1827_v34  ;;  %v1828_v27 = vadd.f32 %v2224_v55, %v1813_v30 }
 0x147   : > { %1863 = vst [vmem:[%s3224_s12] sm:$0xff] %v1855_v15  ;;  %v1856_v36 = vmax.f32 %v1848_v29, 0.0  ;;  %v1861_v32 = vmax.f32 %v1853_v24, 0.0  ;;  %v1854_v8 = vadd.f32 %v2244_v19, %v1830_v1 }
 0x148   : > { %1866 = vst [vmem:[%s3224_s12 + $0x18] sm:$0xff] %v1858_v63  ;;  %v1859_v40 = vmax.f32 %v1851_v39, 0.0  ;;  %v1852_v41 = vadd.f32 %v2240_v37, %v1828_v27 }
 0x149   : > { %1864 = vst [vmem:[%s3224_s12 + $0x8] sm:$0xff] %v1856_v36  ;;  %1869 = vst [vmem:[%s3224_s12 + $0x30] sm:$0xff] %v1861_v32  ;;  %v1862_v23 = vmax.f32 %v1854_v8, 0.0 }
 0x14a   : > { %1867 = vst [vmem:[%s3224_s12 + $0x20] sm:$0xff] %v1859_v40  ;;  %v1860_v45 = vmax.f32 %v1852_v41, 0.0 }
 0x14b   : > { %1870 = vst [vmem:[%s3224_s12 + $0x38] sm:$0xff] %v1862_v23 }
 0x14c   : > { %1868 = vst [vmem:[%s3224_s12 + $0x28] sm:$0xff] %v1860_v45 }
 0x14d PF: > { %s15_s20 = sadd.s32 1, %s2639_s20   ;;  %s3249_s18 = smov %s2635_s19 }
 0x14e   : > { %p12_p5 = scmp.ge.s32.totalorder %s15_s20, 4   ;;  %s3250_s19 = smov %s3252_s21 }
 0x150   :  { %14 = sbr.rel (!%p12_p5) target bundleno = 2 (0x2), region = 84 }

// kernel: resblock_forward.2
= control target key start
LH: loop header
LB: loop body
LE: loop exit
PB: predicated region body
PF: predicated region fallthrough
CT: control target
= control target key end

     0   :  { %s3437_s17 = smov 0   ;;  %s3439_s18 = smov 0   ;;  %s4048_s0 = inlined_call_operand.vmem [shape: bf16[2,9,9,128], index: 0, kind: input, shape index: {}]   ;;  %s4049_s1 = inlined_call_operand.vmem [shape: bf16[2,9,9,128], index: 1, kind: input, shape index: {}]   ;;  %s4050_s2 = inlined_call_operand.vmem [shape: bf16[2,9,9,128], index: 2, kind: input, shape index: {}]   ;;  %s4051_s3 = inlined_call_operand.vmem [shape: bf16[2,9,9,128], index: 3, kind: input, shape index: {}]   ;;  %s4052_s4 = inlined_call_operand.vmem [shape: bf16[1152,128], index: 4, kind: input, shape index: {}]   ;;  %s4053_s5 = inlined_call_operand.vmem [shape: f32[1,128], index: 5, kind: input, shape index: {}]   ;;  %s4054_s6 = inlined_call_operand.vmem [shape: f32[1,128], index: 6, kind: input, shape index: {}]   ;;  %s4055_s7 = inlined_call_operand.vmem [shape: bf16[128,128], index: 7, kind: input, shape index: {}]   ;;  %s4056_s8 = inlined_call_operand.vmem [shape: f32[1,128], index: 8, kind: input, shape index: {}]   ;;  %s4057_s9 = inlined_call_operand.vmem [shape: f32[1,128], index: 9, kind: input, shape index: {}]   ;;  %s4058_s10 = inlined_call_operand.vmem [shape: bf16[2,10,10,128], index: 10, kind: output, shape index: {0}]   ;;  %s4059_s11 = inlined_call_operand.vmem [shape: bf16[2,64,128], index: 11, kind: output, shape index: {1}]  }
   0x1   :  { %s3441_s19 = smov 0  }
   0x2 LB: > { %s31_s20 = sadd.s32 1, %s3370_s18  ;;  %p2691_p0 = scmp.ge.s32.totalorder %s3374_s19, 1  ;;  %s3374_s19 = sphi %s3441_s19, %s22_s19   ;;  %s3370_s18 = sphi %s3439_s18, %s4065_s18   ;;  %s3366_s17 = sphi %s3437_s17, %s4064_s17  }
   0x3   : > { %p32_p1 = scmp.ge.s32.totalorder %s31_s20, 2  ;;  %p436_p2 = scmp.lt.s32.totalorder %s3374_s19, 3 }
   0x5   : > { %s4067_s20 = smov (%p32_p1, %s31_s20), 0  ;;  %p437_p3 = pnand %p2691_p0, %p436_p2 }
   0x6   : > { %v3220_v0 = vld [vmem:[%s4052_s4 + $0x40] sm:$0xff] (!%p437_p3)   ;;  %v3224_v4 = vld [vmem:[%s4052_s4 + $0x48] sm:$0xff] (!%p437_p3)   ;;  %v3228_v8 = vld [vmem:[%s4052_s4 + $0x50] sm:$0xff] (!%p437_p3)   ;;  %p522_p4 = scmp.lt.s32.totalorder (!%p437_p3), %s3366_s17, 1  ;;  %vm2157_vm0 = vcmask (!%p437_p3), 1043456   ;;  %vm2163_vm2 = vcmask (!%p437_p3), 1040384  }
   0x7   : > { %440 = sbr.rel (%p437_p3) target bundleno = 355 (0x163), region = 60  ;;  %v3221_v1 = vld [vmem:[%s4052_s4 + $0xc0] sm:$0xff] (!%p437_p3)   ;;  %2961 = vmatprep.subr.bf16.mxu0 (!%p437_p3), %v3220_v0  ;;  %v3225_v5 = vld [vmem:[%s4052_s4 + $0xc8] sm:$0xff] (!%p437_p3)   ;;  %v3229_v9 = vld [vmem:[%s4052_s4 + $0xd0] sm:$0xff] (!%p437_p3)   ;;  %vm2158_vm1 = vsmask.f32 (!%p437_p3), 7938 }
   0x8   : > { %v3222_v2 = vld [vmem:[%s4052_s4] sm:$0xff] (!%p437_p3)   ;;  %3001 = vmatprep.subr.bf16.mxu1 (!%p437_p3), %v3221_v1  ;;  %v3226_v6 = vld [vmem:[%s4052_s4 + $0x8] sm:$0xff] (!%p437_p3)   ;;  %v3230_v10 = vld [vmem:[%s4052_s4 + $0x10] sm:$0xff] (!%p437_p3)   ;;  %vm2164_vm3 = vsmask.f32 (!%p437_p3), 256 }
   0x9   : > { %v3223_v3 = vld [vmem:[%s4052_s4 + $0x80] sm:$0xff] (!%p437_p3)   ;;  %2962 = vmatpush3.bf16.msra.mxu0 (!%p437_p3), %v3222_v2  ;;  %v3227_v7 = vld [vmem:[%s4052_s4 + $0x88] sm:$0xff] (!%p437_p3)   ;;  %v3231_v11 = vld [vmem:[%s4052_s4 + $0x90] sm:$0xff] (!%p437_p3)  }
   0xa   : > { %3002 = vmatpush3.bf16.msra.mxu1 (!%p437_p3), %v3223_v3  ;;  %2963 = vmatprep.subr.bf16.mxu0 (!%p437_p3), %v3224_v4  ;;  %v3232_v12 = vld [vmem:[%s4052_s4 + $0x58] sm:$0xff] (!%p437_p3)   ;;  %v3236_v16 = vld [vmem:[%s4052_s4 + $0x60] sm:$0xff] (!%p437_p3)   ;;  %v3240_v20 = vld [vmem:[%s4052_s4 + $0x68] sm:$0xff] (!%p437_p3)  }
   0xb   : > { %3003 = vmatprep.subr.bf16.mxu1 (!%p437_p3), %v3225_v5  ;;  %v3233_v13 = vld [vmem:[%s4052_s4 + $0xd8] sm:$0xff] (!%p437_p3)   ;;  %v3237_v17 = vld [vmem:[%s4052_s4 + $0xe0] sm:$0xff] (!%p437_p3)   ;;  %v3241_v21 = vld [vmem:[%s4052_s4 + $0xe8] sm:$0xff] (!%p437_p3)  }
   0xc   : > { %v3234_v14 = vld [vmem:[%s4052_s4 + $0x18] sm:$0xff] (!%p437_p3)   ;;  %v3238_v18 = vld [vmem:[%s4052_s4 + $0x20] sm:$0xff] (!%p437_p3)   ;;  %v3242_v22 = vld [vmem:[%s4052_s4 + $0x28] sm:$0xff] (!%p437_p3)  }
   0xd   : > { %2964 = vmatpush3.bf16.msra.mxu0 (!%p437_p3), %v3226_v6  ;;  %v3235_v15 = vld [vmem:[%s4052_s4 + $0x98] sm:$0xff] (!%p437_p3)   ;;  %v3239_v19 = vld [vmem:[%s4052_s4 + $0xa0] sm:$0xff] (!%p437_p3)   ;;  %v3243_v23 = vld [vmem:[%s4052_s4 + $0xa8] sm:$0xff] (!%p437_p3)  }
   0xe   : > { %3004 = vmatpush3.bf16.msra.mxu1 %v3227_v7  ;;  %2965 = vmatprep.subr.bf16.mxu0 %v3228_v8  ;;  %s4069_s17 = smov (!%p522_p4, %s3366_s17), 1  ;;  %v3244_v24 = vld [vmem:[%s4052_s4 + $0x70] sm:$0xff]   ;;  %v3248_v28 = vld [vmem:[%s4052_s4 + $0x78] sm:$0xff]   ;;  %v3259_v44 = vld [vmem:[%s4052_s4 + $0x140] sm:$0xff]  }
   0xf   : > { %3005 = vmatprep.subr.bf16.mxu1 %v3229_v9  ;;  %v3245_v25 = vld [vmem:[%s4052_s4 + $0xf0] sm:$0xff]   ;;  %s3546_s13 = smul.u32 72, %s4069_s17  ;;  %v3249_v29 = vld [vmem:[%s4052_s4 + $0xf8] sm:$0xff]   ;;  %v3260_v45 = vld [vmem:[%s4052_s4 + $0x100] sm:$0xff]   ;;  %s2921_s23 = sshll.u32 %s4069_s17, 5 }
  0x10   : > { %v3246_v26 = vld [vmem:[%s4052_s4 + $0x30] sm:$0xff]   ;;  %v3250_v30 = vld [vmem:[%s4052_s4 + $0x38] sm:$0xff]   ;;  %v3261_v52 = vld [vmem:[%s4052_s4 + $0x1c0] sm:$0xff]   ;;  %s3194_s26 = smul.u32 80, %s4069_s17  ;;  %s3928_s25 = scalar_lea.vmem %s4059_s11, %s2921_s23 }
  0x11   : > { %2966 = vmatpush3.bf16.msra.mxu0 %v3230_v10  ;;  %v3247_v27 = vld [vmem:[%s4052_s4 + $0xb0] sm:$0xff]   ;;  %s3558_s24 = scalar_lea.vmem %s4049_s1, %s3546_s13  ;;  %s3567_s29 = scalar_lea.vmem %s4050_s2, %s3546_s13  ;;  %v3251_v31 = vld [vmem:[%s4052_s4 + $0xb8] sm:$0xff]   ;;  %v3262_v55 = vld [vmem:[%s4052_s4 + $0x180] sm:$0xff]  }
  0x12   : > { %3006 = vmatpush3.bf16.msra.mxu1 %v3231_v11  ;;  %2967 = vmatprep.subr.bf16.mxu0 %v3232_v12  ;;  %s3576_s16 = scalar_lea.vmem %s4048_s0, %s3546_s13  ;;  %v3252_v32 = vld [vmem:[%s3558_s24] ss:$8 sps:$4 sm:$0xff]   ;;  %v619_v35 = vld [vmem:[%s3567_s29 + $0x4] sm:$0x1]  ;;  %v620_v49 = vld [vmem:[%s3567_s29 + $0xc] sm:$0x1]  ;;  %s3753_s28 = scalar_lea.vmem %s4051_s3, %s3546_s13 }
  0x13   : > { %3007 = vmatprep.subr.bf16.mxu1 %v3233_v13  ;;  %v603_v33 = vld [vmem:[%s3567_s29] sm:$0xf]  ;;  %v604_v34 = vld [vmem:[%s3567_s29 + $0x8] sm:$0xf]  ;;  %1693 = vmatprep.mubr.bf16.mxu0 %v3252_v32  ;;  %v595_v39 = vld [vmem:[%s3576_s16 + $0x4] sm:$0x1] }
  0x14   : > { %v2750_v36 = vcombine.low %v603_v33, %v604_v34  ;;  %v579_v37 = vld [vmem:[%s3576_s16] sm:$0xf]  ;;  %v580_v38 = vld [vmem:[%s3576_s16 + $0x8] sm:$0xf]  ;;  %v596_v40 = vld [vmem:[%s3576_s16 + $0xc] sm:$0x1]  ;;  %v3593_v50 = vcombine.low %v603_v33, %v619_v35  ;;  %v3611_v62 = vcombine.low %v604_v34, %v620_v49 }
  0x15   : > { %2968 = vmatpush3.bf16.msra.mxu0 %v3234_v14  ;;  %v2747_v41 = vcombine.low %v579_v37, %v580_v38  ;;  %v2723_v42 = vcombine.low %v579_v37, %v595_v39  ;;  %v2724_v43 = vcombine.low %v580_v38, %v596_v40  ;;  %v3263_v56 = vld [vmem:[%s4052_s4 + $0x148] sm:$0xff]   ;;  %v3266_v0 = vld [vmem:[%s3558_s24 + $0x10] ss:$8 sps:$4 sm:$0xff]   ;;  %v621_v3 = vld [vmem:[%s3567_s29 + $0x14] sm:$0x1] }
  0x16   : > { %3008 = vmatpush3.bf16.msra.mxu1 %v3235_v15  ;;  %2969 = vmatprep.subr.bf16.mxu0 %v3236_v16  ;;  %v3264_v59 = vld [vmem:[%s4052_s4 + $0x108] sm:$0xff]   ;;  %v792_v60 = vshll.u32 %v3593_v50, 16  ;;  %v605_v1 = vld [vmem:[%s3567_s29 + $0x10] sm:$0xf]  ;;  %v606_v2 = vld [vmem:[%s3567_s29 + $0x18] sm:$0xf] }
  0x17   : > { %3009 = vmatprep.subr.bf16.mxu1 %v3237_v17  ;;  %1758 = vmatprep.mubr.bf16.mxu1 %v2750_v36  ;;  %v696_v46 = vshll.u32 %v2723_v42, 16  ;;  %v703_v47 = vshll.u32 %v2724_v43, 16  ;;  %v694_v48 = vshrl.u32 %v2723_v42, 16  ;;  %v701_v51 = vshrl.u32 %v2724_v43, 16  ;;  %v3265_v61 = vld [vmem:[%s4052_s4 + $0x1c8] sm:$0xff]   ;;  %v3274_v16 = vld [vmem:[%s4052_s4 + $0x150] sm:$0xff]   ;;  %vm3944_vm4 = vmand %vm2157_vm0, %vm2158_vm1 }
  0x18   : > { %v790_v4 = vshrl.u32 %v3593_v50, 16  ;;  %v2759_v5 = vcombine.low %v605_v1, %v606_v2  ;;  %v797_v6 = vshrl.u32 %v3611_v62, 16  ;;  %v622_v7 = vld [vmem:[%s3567_s29 + $0x1c] sm:$0x1]  ;;  %v3270_v8 = vld [vmem:[%s4052_s4 + $0x188] sm:$0xff]   ;;  %v799_v11 = vshll.u32 %v3611_v62, 16  ;;  %vm3952_vm5 = vmand %vm2163_vm2, %vm2164_vm3 }
  0x19   : > { %2970 = vmatpush3.bf16.msra.mxu0 %v3238_v18  ;;  %v698_v53 = vrot.slane %v696_v46, 1  ;;  %v705_v54 = vrot.slane %v703_v47, 1  ;;  %v581_v9 = vld [vmem:[%s3576_s16 + $0x10] sm:$0xf]  ;;  %v582_v10 = vld [vmem:[%s3576_s16 + $0x18] sm:$0xf]  ;;  %v3626_v12 = vcombine.low %v605_v1, %v621_v3 }
  0x1a   : > { %3010 = vmatpush3.bf16.msra.mxu1 %v3239_v19  ;;  %2971 = vmatprep.subr.bf16.mxu0 %v3240_v20  ;;  %v597_v13 = vld [vmem:[%s3576_s16 + $0x14] sm:$0x1]  ;;  %v598_v14 = vld [vmem:[%s3576_s16 + $0x1c] sm:$0x1]  ;;  %v2756_v15 = vcombine.low %v581_v9, %v582_v10  ;;  %v3633_v17 = vrot.slane %v792_v60, 1  ;;  %v801_v32 = vrot.slane %v799_v11, 1 }
  0x1b   : > { %3011 = vmatprep.subr.bf16.mxu1 %v3241_v21  ;;  %v699_v57 = vor.u32 %v698_v53, %v694_v48  ;;  %v706_v58 = vor.u32 %v705_v54, %v701_v51  ;;  %v2725_v18 = vcombine.low %v581_v9, %v597_v13  ;;  %v2726_v19 = vcombine.low %v582_v10, %v598_v14  ;;  %v3275_v20 = vld [vmem:[%s4052_s4 + $0x110] sm:$0xff]   ;;  %v3279_v35 = vld [vmem:[%s4052_s4 + $0x118] sm:$0xff]   ;;  %v3281_v39 = vld [vmem:[%s3558_s24 + $0x20] ss:$8 sps:$4 sm:$0xff]  }
  0x1c   : > { %v3280_v37 = vld [vmem:[%s4052_s4 + $0x1d8] sm:$0xff]   ;;  %v607_v40 = vld [vmem:[%s3567_s29 + $0x20] sm:$0xf]  ;;  %v623_v42 = vld [vmem:[%s3567_s29 + $0x24] sm:$0x1] }
  0x1d   : > { %2972 = vmatpush3.bf16.msra.mxu0 %v3242_v22  ;;  %v2749_v63 = vcombine.low %v699_v57, %v706_v58  ;;  %v710_v21 = vshll.u32 %v2725_v18, 16  ;;  %v717_v22 = vshll.u32 %v2726_v19, 16  ;;  %v3664_v46 = vcombine.low %v607_v40, %v623_v42  ;;  %v3285_v47 = vld [vmem:[%s4052_s4 + $0x198] sm:$0xff]   ;;  %v583_v48 = vld [vmem:[%s3576_s16 + $0x20] sm:$0xf]  ;;  %v3293_v9 = vld [vmem:[%s4052_s4 + $0x168] sm:$0xff]  }
  0x1e   : > { %3012 = vmatpush3.bf16.msra.mxu1 %v3243_v23  ;;  %2973 = vmatprep.subr.bf16.mxu0 %v3244_v24  ;;  %v708_v23 = vshrl.u32 %v2725_v18, 16  ;;  %v715_v24 = vshrl.u32 %v2726_v19, 16  ;;  %v584_v51 = vld [vmem:[%s3576_s16 + $0x28] sm:$0xf]  ;;  %v600_v53 = vld [vmem:[%s3576_s16 + $0x2c] sm:$0x1]  ;;  %v795_v18 = vor.u32 %v3633_v17, %v790_v4  ;;  %v802_v19 = vor.u32 %v801_v32, %v797_v6 }
  0x1f   : > { %3013 = vmatprep.subr.bf16.mxu1 %v3245_v25  ;;  %v3638_v25 = vcombine.low %v606_v2, %v622_v7  ;;  %v624_v54 = vld [vmem:[%s3567_s29 + $0x2c] sm:$0x1]  ;;  %v820_v57 = vshll.u32 %v3664_v46, 16  ;;  %v2765_v58 = vcombine.low %v583_v48, %v584_v51  ;;  %v3290_v1 = vld [vmem:[%s4052_s4 + $0x120] sm:$0xff]   ;;  %v585_v17 = vld [vmem:[%s3576_s16 + $0x30] sm:$0xf] }
  0x20   : > { %v3291_v2 = vld [vmem:[%s4052_s4 + $0x1e0] sm:$0xff]   ;;  %v3294_v13 = vld [vmem:[%s4052_s4 + $0x128] sm:$0xff]  }
  0x21   : > { %2974 = vmatpush3.bf16.msra.mxu0 %v3246_v26  ;;  %v806_v26 = vshll.u32 %v3626_v12, 16  ;;  %v813_v36 = vshll.u32 %v3638_v25, 16  ;;  %v811_v49 = vshrl.u32 %v3638_v25, 16  ;;  %v3710_v50 = vrot.slane %v820_v57, 1  ;;  %v3300_v4 = vld [vmem:[%s4052_s4 + $0x1a8] sm:$0xff]  }
  0x22   : > { %3014 = vmatpush3.bf16.msra.mxu1 %v3247_v27  ;;  %2975 = vmatprep.subr.bf16.mxu0 %v3248_v28  ;;  %v3276_v27 = vld [vmem:[%s4052_s4 + $0x1d0] sm:$0xff]   ;;  %v712_v28 = vrot.slane %v710_v21, 1 }
  0x23   : > { %3015 = vmatprep.subr.bf16.mxu1 %v3249_v29  ;;  %v719_v29 = vrot.slane %v717_v22, 1  ;;  %v815_v14 = vrot.slane %v813_v36, 1  ;;  %v3296_v21 = vld [vmem:[%s3558_s24 + $0x30] ss:$8 sps:$4 sm:$0xff]  }
  0x24   : > { %v713_v33 = vor.u32 %v712_v28, %v708_v23  ;;  %v609_v22 = vld [vmem:[%s3567_s29 + $0x30] sm:$0xf]  ;;  %v610_v23 = vld [vmem:[%s3567_s29 + $0x38] sm:$0xf]  ;;  %v601_v28 = vld [vmem:[%s3576_s16 + $0x34] sm:$0x1] }
  0x25   : > { %2976 = vmatpush3.bf16.msra.mxu0 %v3250_v30  ;;  %v3277_v30 = vld [vmem:[%s4052_s4 + $0x190] sm:$0xff]   ;;  %v720_v34 = vor.u32 %v719_v29, %v715_v24  ;;  %v2777_v62 = vcombine.low %v609_v22, %v610_v23  ;;  %v2752_v29 = vcombine.low %v795_v18, %v802_v19  ;;  %v2729_v32 = vcombine.low %v585_v17, %v601_v28  ;;  %v3320_v18 = vld [vmem:[%s4055_s7] sm:$0xff]   ;;  %v2701_v19 = vld [vmem:[%s3576_s16 + $0x18] sm:$0xf] }
  0x26   : > { %3016 = vmatpush3.bf16.msra.mxu1 %v3251_v31  ;;  %3041 = vmatprep.subr.bf16.mxu0 %v3259_v44  ;;  %v3278_v31 = vld [vmem:[%s4052_s4 + $0x158] sm:$0xff]   ;;  %v804_v44 = vshrl.u32 %v3626_v12, 16  ;;  %v625_v24 = vld [vmem:[%s3567_s29 + $0x34] sm:$0x1] }
  0x27   : > { %3081 = vmatprep.subr.bf16.mxu1 %v3261_v52  ;;  %v2758_v38 = vcombine.low %v713_v33, %v720_v34  ;;  %v599_v52 = vld [vmem:[%s3576_s16 + $0x24] sm:$0x1] }
  0x28   : > { %1694 = vmatmul.mubr.bf16.vlgmr.msra.gmra.mrb[0].mxu0 %v2747_v41  ;;  %v608_v41 = vld [vmem:[%s3567_s29 + $0x28] sm:$0xf] }
  0x29   : > { %3042 = vmatpush3.bf16.msra.mxu0 %v3260_v45  ;;  %1759 = vmatmul.mubr.bf16.vlgmr.msra.gmra.mrb[0].mxu1 %v2749_v63  ;;  %v2768_v43 = vcombine.low %v607_v40, %v608_v41  ;;  %v3662_v45 = vrot.slane %v806_v26, 1  ;;  %v3685_v3 = vcombine.low %v608_v41, %v624_v54  ;;  %v818_v26 = vshrl.u32 %v3664_v46, 16  ;;  %v3305_v40 = vld [vmem:[%s4052_s4 + $0x130] sm:$0xff]   ;;  %v3324_v46 = vld [vmem:[%s4052_s4 + $0x218] sm:$0xff]  }
  0x2a   : > { %3043 = vmatprep.subr.bf16.mxu0 %v3263_v56  ;;  %1701 = vmatprep.mubr.bf16.mxu0 %v3266_v0  ;;  %v2728_v56 = vcombine.low %v584_v51, %v600_v53  ;;  %v3306_v41 = vld [vmem:[%s4052_s4 + $0x1f0] sm:$0xff]   ;;  %v816_v53 = vor.u32 %v815_v14, %v811_v49 }
  0x2b   : > { %3082 = vmatpush3.bf16.msra.mxu1 %v3262_v55  ;;  %1766 = vmatprep.mubr.bf16.mxu1 %v2759_v5  ;;  %v2727_v55 = vcombine.low %v583_v48, %v599_v52  ;;  %v825_v6 = vshrl.u32 %v3685_v3, 16  ;;  %v3307_v51 = vld [vmem:[%s4052_s4 + $0x1b0] sm:$0xff]   ;;  %v809_v52 = vor.u32 %v3662_v45, %v804_v44  ;;  %v3310_v44 = vld [vmem:[%s4052_s4 + $0x1f8] sm:$0xff]  }
  0x2c   : > { %3083 = vmatprep.subr.bf16.mxu1 %v3265_v61  ;;  %v731_v61 = vshll.u32 %v2728_v56, 16  ;;  %v729_v0 = vshrl.u32 %v2728_v56, 16  ;;  %v3311_v45 = vld [vmem:[%s4052_s4 + $0x1b8] sm:$0xff]  }
  0x2d   : > { %3044 = vmatpush3.bf16.msra.mxu0 %v3264_v59  ;;  %v3289_v59 = vld [vmem:[%s4052_s4 + $0x160] sm:$0xff]   ;;  %v724_v60 = vshll.u32 %v2727_v55, 16  ;;  %v722_v63 = vshrl.u32 %v2727_v55, 16  ;;  %v3308_v55 = vld [vmem:[%s4052_s4 + $0x178] sm:$0xff]   ;;  %v2761_v49 = vcombine.low %v809_v52, %v816_v53 }
  0x2e   : > { %3045 = vmatprep.subr.bf16.mxu0 %v3274_v16  ;;  %v733_v7 = vrot.slane %v731_v61, 1  ;;  %v3295_v16 = vld [vmem:[%s4052_s4 + $0x1e8] sm:$0xff]  }
  0x2f   : > { %3084 = vmatpush3.bf16.msra.mxu1 %v3270_v8  ;;  %v726_v5 = vrot.slane %v724_v60, 1  ;;  %v3292_v8 = vld [vmem:[%s4052_s4 + $0x1a0] sm:$0xff]  }
  0x30   : > { %1702 = vmatmul.mubr.bf16.gmra.mrb[4].mxu0 %v2756_v15  ;;  %3085 = vmatprep.subr.bf16.mxu1 %v3276_v27  ;;  %v734_v11 = vor.u32 %v733_v7, %v729_v0  ;;  %v827_v15 = vshll.u32 %v3685_v3, 16  ;;  %v586_v27 = vld [vmem:[%s3576_s16 + $0x38] sm:$0xf]  ;;  %v3312_v61 = vld [vmem:[%s3753_s28] ss:$8 sps:$4 sm:$0xff]  }
  0x31   : > { %3046 = vmatpush3.bf16.msra.mxu0 %v3275_v20  ;;  %1767 = vmatmul.mubr.bf16.gmra.mrb[4].mxu1 %v2758_v38  ;;  %v727_v10 = vor.u32 %v726_v5, %v722_v63  ;;  %v2774_v33 = vcombine.low %v585_v17, %v586_v27  ;;  %v738_v38 = vshll.u32 %v2729_v32, 16  ;;  %v3313_v63 = vld [vmem:[%s4052_s4 + $0x200] sm:$0xff]   ;;  %v3772_v5 = vld [vmem:[%s3576_s16 + $0x10] sm:$0xf]  ;;  %v3316_v7 = vld [vmem:[%s4052_s4 + $0x208] sm:$0xff]  }
  0x32   : > { %3047 = vmatprep.subr.bf16.mxu0 %v3278_v31  ;;  %1709 = vmatprep.mubr.bf16.mxu0 %v3281_v39  ;;  %v602_v31 = vld [vmem:[%s3576_s16 + $0x3c] sm:$0x1]  ;;  %v829_v36 = vrot.slane %v827_v15, 1  ;;  %v736_v39 = vshrl.u32 %v2729_v32, 16  ;;  %v3328_v17 = vld [vmem:[%s3558_s24 + $0x28] ss:$8 sps:$4 sm:$0xff]  }
  0x33   : > { %3086 = vmatpush3.bf16.msra.mxu1 %v3277_v30  ;;  %1774 = vmatprep.mubr.bf16.mxu1 %v2768_v43  ;;  %v2767_v20 = vcombine.low %v727_v10, %v734_v11  ;;  %v626_v30 = vld [vmem:[%s3567_s29 + $0x3c] sm:$0x1]  ;;  %v2730_v34 = vcombine.low %v586_v27, %v602_v31  ;;  %v740_v48 = vrot.slane %v738_v38, 1  ;;  %v3318_v11 = vld [vmem:[%s4052_s4 + $0x210] sm:$0xff]   ;;  %v2719_v31 = vld [vmem:[%s3576_s16 + $0x2c] sm:$0x1]  ;;  %s3861_s29 = scalar_lea.vmem %s4058_s10, %s3194_s26 }
  0x34   : > { %3087 = vmatprep.subr.bf16.mxu1 %v3280_v37  ;;  %v3724_v37 = vcombine.low %v609_v22, %v625_v24  ;;  %v3732_v42 = vcombine.low %v610_v23, %v626_v30  ;;  %v830_v14 = vor.u32 %v829_v36, %v825_v6  ;;  %v2717_v24 = vld [vmem:[%s3576_s16 + $0x1c] sm:$0x1]  ;;  %v3329_v6 = vld [vmem:[%s4055_s7 + $0x10] sm:$0xff]  }
  0x35   : > { %3048 = vmatpush3.bf16.msra.mxu0 %v3279_v35  ;;  %v3304_v35 = vld [vmem:[%s4052_s4 + $0x170] sm:$0xff]   ;;  %v745_v43 = vshll.u32 %v2730_v34, 16  ;;  %v741_v57 = vor.u32 %v740_v48, %v736_v39  ;;  %v3811_v28 = vcombine.low %v2701_v19, %v2717_v24  ;;  %v3334_v36 = vld [vmem:[%s4055_s7 + $0x18] sm:$0xff]  }
  0x36   : > { %3049 = vmatprep.subr.bf16.mxu0 %v3289_v59  ;;  %v834_v56 = vshll.u32 %v3724_v37, 16  ;;  %v841_v12 = vshll.u32 %v3732_v42, 16  ;;  %v832_v59 = vshrl.u32 %v3724_v37, 16  ;;  %v2704_v30 = vld [vmem:[%s3576_s16 + $0x30] sm:$0xf] }
  0x37   : > { %3088 = vmatpush3.bf16.msra.mxu1 %v3285_v47  ;;  %v743_v47 = vshrl.u32 %v2730_v34, 16  ;;  %v747_v54 = vrot.slane %v745_v43, 1  ;;  %v2720_v32 = vld [vmem:[%s3576_s16 + $0x34] sm:$0x1]  ;;  %v3333_v34 = vld [vmem:[%s4052_s4 + $0x228] sm:$0xff]   ;;  %v902_v37 = vshll.u32 %v3811_v28, 16 }
  0x38   : > { %1710 = vmatmul.mubr.bf16.gmra.mrb[8].mxu0 %v2765_v58  ;;  %3089 = vmatprep.subr.bf16.mxu1 %v3291_v2  ;;  %v3309_v58 = vld [vmem:[%s4052_s4 + $0x138] sm:$0xff]   ;;  %v836_v0 = vrot.slane %v834_v56, 1  ;;  %v3769_v2 = vld [vmem:[%s3576_s16 + $0x8] sm:$0xf]  ;;  %v843_v15 = vrot.slane %v841_v12, 1 }
  0x39   : > { %3050 = vmatpush3.bf16.msra.mxu0 %v3290_v1  ;;  %1775 = vmatmul.mubr.bf16.gmra.mrb[8].mxu1 %v2767_v20  ;;  %v748_v25 = vor.u32 %v747_v54, %v743_v47  ;;  %v3314_v1 = vld [vmem:[%s3558_s24 + $0x8] ss:$8 sps:$4 sm:$0xff]   ;;  %v2753_v10 = vcombine.low %v3769_v2, %v3772_v5  ;;  %v2702_v20 = vld [vmem:[%s3576_s16 + $0x20] sm:$0xf] }
  0x3a   : > { %3051 = vmatprep.subr.bf16.mxu0 %v3293_v9  ;;  %1717 = vmatprep.mubr.bf16.mxu0 %v3296_v21  ;;  %v3317_v9 = vld [vmem:[%s3753_s28 + $0x10] ss:$8 sps:$4 sm:$0xff]   ;;  %v3325_v21 = vld [vmem:[%s4055_s7 + $0x8] sm:$0xff]   ;;  %v837_v22 = vor.u32 %v836_v0, %v832_v59  ;;  %v3338_v54 = vld [vmem:[%s4055_s7 + $0x20] sm:$0xff]  }
  0x3b   : > { %3090 = vmatpush3.bf16.msra.mxu1 %v3292_v8  ;;  %1782 = vmatprep.mubr.bf16.mxu1 %v2777_v62  ;;  %v2776_v60 = vcombine.low %v741_v57, %v748_v25  ;;  %v839_v8 = vshrl.u32 %v3732_v42, 16  ;;  %v2762_v62 = vcombine.low %v2701_v19, %v2702_v20  ;;  %v3336_v47 = vld [vmem:[%s4052_s4 + $0x230] sm:$0xff]   ;;  %v3337_v48 = vld [vmem:[%s3558_s24 + $0x38] ss:$8 sps:$4 sm:$0xff]   ;;  %v2721_v57 = vld [vmem:[%s3576_s16 + $0x3c] sm:$0x1] }
  0x3c   : > { %3091 = vmatprep.subr.bf16.mxu1 %v3295_v16  ;;  %v3319_v16 = vld [vmem:[%s3558_s24 + $0x18] ss:$8 sps:$4 sm:$0xff]  }
  0x3d   : > { %3052 = vmatpush3.bf16.msra.mxu0 %v3294_v13  ;;  %v823_v13 = vor.u32 %v3710_v50, %v818_v26  ;;  %v844_v23 = vor.u32 %v843_v15, %v839_v8  ;;  %v2718_v26 = vld [vmem:[%s3576_s16 + $0x24] sm:$0x1]  ;;  %v3326_v50 = vld [vmem:[%s3753_s28 + $0x20] ss:$8 sps:$4 sm:$0xff]   ;;  %v3342_v25 = vld [vmem:[%s4052_s4 + $0x238] sm:$0xff]  }
  0x3e   : > { %3053 = vmatprep.subr.bf16.mxu0 %v3304_v35  ;;  %v900_v35 = vshrl.u32 %v3811_v28, 16  ;;  %v2706_v56 = vld [vmem:[%s3576_s16 + $0x40] sm:$0xf]  ;;  %v3346_v8 = vld [vmem:[%s4055_s7 + $0x30] sm:$0xff]  }
  0x3f   : > { %3092 = vmatpush3.bf16.msra.mxu1 %v3300_v4  ;;  %v2770_v3 = vcombine.low %v823_v13, %v830_v14  ;;  %v3327_v4 = vld [vmem:[%s4052_s4 + $0x220] sm:$0xff]   ;;  %v2779_v27 = vcombine.low %v837_v22, %v844_v23  ;;  %v3349_v28 = vld [vmem:[%s3753_s28 + $0x10] ss:$8 sps:$4 sm:$0xff]  }
  0x40   : > { %1718 = vmatmul.mubr.bf16.gmra.mrb[12].mxu0 %v2774_v33  ;;  %3093 = vmatprep.subr.bf16.mxu1 %v3306_v41  ;;  %v2742_v33 = vcombine.low %v2702_v20, %v2718_v26  ;;  %v3335_v41 = vld [vmem:[%s3753_s28 + $0x30] ss:$8 sps:$4 sm:$0xff]  }
  0x41   : > { %1823 = vmatprep.mubr.bf16.mxu0 %v2752_v29  ;;  %3054 = vmatpush3.bf16.msra.mxu0 %v3305_v40  ;;  %v2703_v29 = vld [vmem:[%s3576_s16 + $0x28] sm:$0xf]  ;;  %v2744_v40 = vcombine.low %v2704_v30, %v2720_v32 }
  0x42   : > { %3055 = vmatprep.subr.bf16.mxu0 %v3308_v55  ;;  %1783 = vmatmul.mubr.bf16.gmra.mrb[12].mxu1 %v2776_v60  ;;  %v907_v38 = vshrl.u32 %v2742_v33, 16  ;;  %v2743_v39 = vcombine.low %v2703_v29, %v2719_v31  ;;  %v909_v42 = vshll.u32 %v2742_v33, 16  ;;  %v2771_v43 = vcombine.low %v2703_v29, %v2704_v30  ;;  %v2705_v55 = vld [vmem:[%s3576_s16 + $0x38] sm:$0xf]  ;;  %v3350_v31 = vld [vmem:[%s3753_s28 + $0x20] ss:$8 sps:$4 sm:$0xff]  }
  0x43   : > { %3094 = vmatpush3.bf16.msra.mxu1 %v3307_v51  ;;  %1888 = vmatprep.mubr.bf16.mxu1 %v3314_v1  ;;  %v904_v51 = vrot.slane %v902_v37, 1  ;;  %v923_v53 = vshll.u32 %v2744_v40, 16  ;;  %v921_v1 = vshrl.u32 %v2744_v40, 16  ;;  %v3351_v33 = vld [vmem:[%s3753_s28 + $0x30] ss:$8 sps:$4 sm:$0xff]  }
  0x44   : > { %3095 = vmatprep.subr.bf16.mxu1 %v3310_v44  ;;  %v916_v52 = vshll.u32 %v2743_v39, 16  ;;  %v911_v12 = vrot.slane %v909_v42, 1  ;;  %v2745_v44 = vcombine.low %v2705_v55, %v2721_v57  ;;  %v914_v59 = vshrl.u32 %v2743_v39, 16 }
  0x45   : > { %3056 = vmatpush3.bf16.msra.mxu0 %v3309_v58  ;;  %v2722_v58 = vld [vmem:[%s3576_s16 + $0x44] sm:$0x1] }
  0x46   : > { %3145 = vmatprep.subr.bf16.mxu0 %v3313_v63  ;;  %v2746_v60 = vcombine.low %v2706_v56, %v2722_v58  ;;  %v918_v0 = vrot.slane %v916_v52, 1  ;;  %v912_v15 = vor.u32 %v911_v12, %v907_v38 }
  0x47   : > { %3096 = vmatpush3.bf16.msra.mxu1 %v3311_v45  ;;  %v3343_v45 = vld [vmem:[%s4055_s7 + $0x28] sm:$0xff]  }
  0x48   : > { %1824 = vmatmul.mubr.bf16.vlgmr.msra.gmra.mrb[16].mxu0 %v3312_v61  ;;  %3169 = vmatprep.subr.bf16.mxu1 %v3320_v18  ;;  %v2716_v61 = vld [vmem:[%s3576_s16 + $0x14] sm:$0x1]  ;;  %v937_v19 = vshll.u32 %v2746_v60, 16 }
  0x49   : > { %1831 = vmatprep.mubr.bf16.mxu0 %v2761_v49  ;;  %3146 = vmatpush3.bf16.msra.mxu0 %v3313_v63  ;;  %v2715_v49 = vld [vmem:[%s3576_s16 + $0xc] sm:$0x1] }
  0x4a   : > { %3147 = vmatprep.subr.bf16.mxu0 %v3316_v7  ;;  %1889 = vmatmul.mubr.bf16.vlgmr.msra.gmra.mrb[16].mxu1 %v2753_v10  ;;  %v2739_v63 = vcombine.low %v3769_v2, %v2715_v49  ;;  %v905_v10 = vor.u32 %v904_v51, %v900_v35 }
  0x4b   : > { %1896 = vmatprep.mubr.bf16.mxu1 %v3319_v16  ;;  %3170 = vmatpush3.bf16.msra.mxu1 %v3320_v18  ;;  %v930_v16 = vshll.u32 %v2745_v44, 16 }
  0x4c   : > { %3171 = vmatprep.subr.bf16.mxu1 %v3325_v21  ;;  %v886_v13 = vshrl.u32 %v2739_v63, 16  ;;  %v888_v14 = vshll.u32 %v2739_v63, 16  ;;  %v2764_v26 = vcombine.low %v905_v10, %v912_v15 }
  0x4d   : > { %3148 = vmatpush3.bf16.msra.mxu0 %v3316_v7  ;;  %v2740_v7 = vcombine.low %v3772_v5, %v2716_v61  ;;  %v3347_v5 = vld [vmem:[%s4055_s7 + $0x38] sm:$0xff]  }
  0x4e   : > { %3149 = vmatprep.subr.bf16.mxu0 %v3318_v11  ;;  %v890_v20 = vrot.slane %v888_v14, 1 }
  0x4f   : > { %3172 = vmatpush3.bf16.msra.mxu1 %v3325_v21  ;;  %v893_v18 = vshrl.u32 %v2740_v7, 16  ;;  %v895_v2 = vshll.u32 %v2740_v7, 16  ;;  %v919_v21 = vor.u32 %v918_v0, %v914_v59 }
  0x50   : > { %1832 = vmatmul.mubr.bf16.gmra.mrb[20].mxu0 %v3317_v9  ;;  %3173 = vmatprep.subr.bf16.mxu1 %v3329_v6  ;;  %v925_v9 = vrot.slane %v923_v53, 1  ;;  %v891_v23 = vor.u32 %v890_v20, %v886_v13 }
  0x51   : > { %3150 = vmatpush3.bf16.msra.mxu0 %v3318_v11  ;;  %1839 = vmatprep.mubr.bf16.mxu0 %v2770_v3  ;;  %v2780_v11 = vcombine.low %v2705_v55, %v2706_v56  ;;  %v897_v3 = vrot.slane %v895_v2, 1 }
  0x52   : > { %3151 = vmatprep.subr.bf16.mxu0 %v3324_v46  ;;  %1897 = vmatmul.mubr.bf16.gmra.mrb[20].mxu1 %v2762_v62  ;;  %v926_v22 = vor.u32 %v925_v9, %v921_v1  ;;  %v932_v62 = vrot.slane %v930_v16, 1 }
  0x53   : > { %1904 = vmatprep.mubr.bf16.mxu1 %v3328_v17  ;;  %3174 = vmatpush3.bf16.msra.mxu1 %v3329_v6  ;;  %v898_v24 = vor.u32 %v897_v3, %v893_v18  ;;  %v939_v6 = vrot.slane %v937_v19, 1 }
  0x54   : > { %3175 = vmatprep.subr.bf16.mxu1 %v3334_v36 }
  0x55   : > { %3152 = vmatpush3.bf16.msra.mxu0 %v3324_v46  ;;  %v3348_v46 = vld [vmem:[%s3753_s28] ss:$8 sps:$4 sm:$0xff]   ;;  %v2755_v17 = vcombine.low %v891_v23, %v898_v24 }
  0x56   : > { %3153 = vmatprep.subr.bf16.mxu0 %v3327_v4 }
  0x57   : > { %3176 = vmatpush3.bf16.msra.mxu1 %v3334_v36 }
  0x58   : > { %1840 = vmatmul.mubr.bf16.gmra.mrb[24].mxu0 %v3326_v50  ;;  %3177 = vmatprep.subr.bf16.mxu1 %v3338_v54  ;;  %v928_v50 = vshrl.u32 %v2745_v44, 16 }
  0x59   : > { %1847 = vmatprep.mubr.bf16.mxu0 %v2779_v27  ;;  %3154 = vmatpush3.bf16.msra.mxu0 %v3327_v4  ;;  %v935_v4 = vshrl.u32 %v2746_v60, 16  ;;  %v2773_v27 = vcombine.low %v919_v21, %v926_v22 }
  0x5a   : > { %3155 = vmatprep.subr.bf16.mxu0 %v3333_v34  ;;  %1905 = vmatmul.mubr.bf16.gmra.mrb[24].mxu1 %v2771_v43  ;;  %v933_v29 = vor.u32 %v932_v62, %v928_v50 }
  0x5b   : > { %1912 = vmatprep.mubr.bf16.mxu1 %v3337_v48  ;;  %3178 = vmatpush3.bf16.msra.mxu1 %v3338_v54  ;;  %v940_v30 = vor.u32 %v939_v6, %v935_v4 }
  0x5c   : > { %3179 = vmatprep.subr.bf16.mxu1 %v3343_v45 }
  0x5d   : > { %3156 = vmatpush3.bf16.msra.mxu0 %v3333_v34  ;;  %v2782_v32 = vcombine.low %v933_v29, %v940_v30  ;;  %v3376_v34 = vmov 0  }
  0x5e   : > { %3157 = vmatprep.subr.bf16.mxu0 %v3336_v47  ;;  %2030 = vst [vmem:[%s3861_s29 + $0x18] sm:$0xf] %v3376_v34  ;;  %2031 = vst [vmem:[%s3861_s29 + $0x1c] sm:$0x1] %v3376_v34 }
  0x5f   : > { %3180 = vmatpush3.bf16.msra.mxu1 %v3343_v45  ;;  %2024 = vst [vmem:[%s3861_s29] sm:$0xf] %v3376_v34  ;;  %2025 = vst [vmem:[%s3861_s29 + $0x4] sm:$0x1] %v3376_v34 }
  0x60   : > { %1848 = vmatmul.mubr.bf16.gmra.mrb[28].mxu0 %v3335_v41  ;;  %3181 = vmatprep.subr.bf16.mxu1 %v3346_v8  ;;  %2026 = vst [vmem:[%s3861_s29 + $0x8] sm:$0xf] %v3376_v34  ;;  %2027 = vst [vmem:[%s3861_s29 + $0xc] sm:$0x1] %v3376_v34 }
  0x61   : > { %3158 = vmatpush3.bf16.msra.mxu0 %v3336_v47  ;;  %3161 = vmatprep.mubr.bf16.mxu0 %v2755_v17  ;;  %2028 = vst [vmem:[%s3861_s29 + $0x10] sm:$0xf] %v3376_v34  ;;  %2029 = vst [vmem:[%s3861_s29 + $0x14] sm:$0x1] %v3376_v34 }
  0x62   : > { %3159 = vmatprep.subr.bf16.mxu0 %v3342_v25  ;;  %1913 = vmatmul.mubr.bf16.gmra.mrb[28].mxu1 %v2780_v11  ;;  %2032 = vst [vmem:[%s3861_s29 + $0x20] sm:$0xf] %v3376_v34  ;;  %2033 = vst [vmem:[%s3861_s29 + $0x24] sm:$0x1] %v3376_v34 }
  0x63   : > { %3185 = vmatprep.mubr.bf16.mxu1 %v3348_v46  ;;  %3182 = vmatpush3.bf16.msra.mxu1 %v3346_v8  ;;  %2034 = vst [vmem:[%s3861_s29 + $0x28] sm:$0xf] %v3376_v34  ;;  %2035 = vst [vmem:[%s3861_s29 + $0x2c] sm:$0x1] %v3376_v34 }
  0x64   : > { %3183 = vmatprep.subr.bf16.mxu1 %v3347_v5  ;;  %2036 = vst [vmem:[%s3861_s29 + $0x30] sm:$0xf] %v3376_v34  ;;  %2037 = vst [vmem:[%s3861_s29 + $0x34] sm:$0x1] %v3376_v34 }
  0x65   : > { %3160 = vmatpush3.bf16.msra.mxu0 %v3342_v25  ;;  %2038 = vst [vmem:[%s3861_s29 + $0x38] sm:$0xf] %v3376_v34  ;;  %2039 = vst [vmem:[%s3861_s29 + $0x3c] sm:$0x1] %v3376_v34 }
  0x66   : > { %2040 = vst [vmem:[%s3861_s29 + $0x40] sm:$0xf] %v3376_v34  ;;  %2041 = vst [vmem:[%s3861_s29 + $0x44] sm:$0x1] %v3376_v34 }
  0x67   : > { %3184 = vmatpush3.bf16.msra.mxu1 %v3347_v5  ;;  %2042 = vst [vmem:[%s3861_s29 + $0x48] sm:$0xf] %v3376_v34  ;;  %2043 = vst [vmem:[%s3861_s29 + $0x4c] sm:$0x1] %v3376_v34 }
  0x68   : > { %3162 = vmatmul.mubr.bf16.vlgmr.msra.gmra.mrb[32].mxu0 %v2764_v26 }
  0x69   : > { %3165 = vmatprep.mubr.bf16.mxu0 %v2773_v27 }
  0x6a   : > { %3186 = vmatmul.mubr.bf16.vlgmr.msra.gmra.mrb[32].mxu1 %v3349_v28 }
  0x6b   : > { %3189 = vmatprep.mubr.bf16.mxu1 %v3350_v31 }
  0x70   : > { %3166 = vmatmul.mubr.bf16.gmra.mrb[36].mxu0 %v2782_v32 }
  0x72   : > { %3190 = vmatmul.mubr.bf16.gmra.mrb[36].mxu1 %v3351_v33 }
  0xfb   : > { %v2977_v35 = vpop.f32.mrb[0].mxu0 }
  0xfc   : > { %v2978_v36 = vpop.f32.mrb[1].mxu0  ;;  %v3017_v41 = vpop.f32.mrb[0].mxu1 }
  0xfd   : > { %v2979_v37 = vadd.f32 %v2978_v36, %v2977_v35  ;;  %v2980_v38 = vpop.f32.mrb[2].mxu0  ;;  %v3018_v42 = vpop.f32.mrb[1].mxu1 }
  0xfe   : > { %v2981_v39 = vpop.f32.mrb[3].mxu0  ;;  %v3019_v43 = vadd.f32 %v3018_v42, %v3017_v41  ;;  %v3020_v47 = vpop.f32.mrb[2].mxu1 }
  0xff   : > { %v2982_v40 = vadd.f32 %v2981_v39, %v2980_v38  ;;  %v3021_v48 = vpop.f32.mrb[3].mxu1 }
 0x100   : > { %v1761_v51 = vadd.f32 %v3019_v43, %v2979_v37  ;;  %v3022_v52 = vadd.f32 %v3021_v48, %v3020_v47 }
 0x102   : > { %v1764_v55 = vadd.f32 %v3022_v52, %v2982_v40 }
 0x103   : > { %v2983_v53 = vpop.f32.mrb[4].mxu0 }
 0x104   : > { %v2984_v54 = vpop.f32.mrb[5].mxu0  ;;  %v3023_v25 = vpop.f32.mrb[4].mxu1 }
 0x105   : > { %v2985_v56 = vadd.f32 %v2984_v54, %v2983_v53  ;;  %v2986_v57 = vpop.f32.mrb[6].mxu0  ;;  %v3024_v44 = vpop.f32.mrb[5].mxu1 }
 0x106   : > { %v2987_v58 = vpop.f32.mrb[7].mxu0  ;;  %v3025_v45 = vadd.f32 %v3024_v44, %v3023_v25  ;;  %v3026_v49 = vpop.f32.mrb[6].mxu1 }
 0x107   : > { %v2988_v12 = vadd.f32 %v2987_v58, %v2986_v57  ;;  %v3027_v59 = vpop.f32.mrb[7].mxu1 }
 0x108   : > { %v1769_v60 = vadd.f32 %v3025_v45, %v2985_v56  ;;  %v3028_v61 = vadd.f32 %v3027_v59, %v3026_v49 }
 0x10a   : > { %v1772_v0 = vadd.f32 %v3028_v61, %v2988_v12 }
 0x10b   : > { %v2989_v63 = vpop.f32.mrb[8].mxu0 }
 0x10c   : > { %v2990_v1 = vpop.f32.mrb[9].mxu0  ;;  %v3029_v11 = vpop.f32.mrb[8].mxu1 }
 0x10d   : > { %v2991_v7 = vadd.f32 %v2990_v1, %v2989_v63  ;;  %v2992_v8 = vpop.f32.mrb[10].mxu0  ;;  %v3030_v13 = vpop.f32.mrb[9].mxu1 }
 0x10e   : > { %v2993_v9 = vpop.f32.mrb[11].mxu0  ;;  %v3031_v14 = vadd.f32 %v3030_v13, %v3029_v11  ;;  %v3032_v15 = vpop.f32.mrb[10].mxu1 }
 0x10f   : > { %v2994_v10 = vadd.f32 %v2993_v9, %v2992_v8  ;;  %v3033_v16 = vpop.f32.mrb[11].mxu1 }
 0x110   : > { %v1777_v18 = vadd.f32 %v3031_v14, %v2991_v7  ;;  %v3034_v2 = vadd.f32 %v3033_v16, %v3032_v15 }
 0x112   : > { %v1780_v46 = vadd.f32 %v3034_v2, %v2994_v10 }
 0x113   : > { %v2995_v19 = vpop.f32.mrb[12].mxu0 }
 0x114   : > { %v2996_v20 = vpop.f32.mrb[13].mxu0 }
 0x115   : > { %v2997_v3 = vadd.f32 %v2996_v20, %v2995_v19  ;;  %v2998_v5 = vpop.f32.mrb[14].mxu0  ;;  %v3035_v23 = vpop.f32.mrb[12].mxu1 }
 0x116   : > { %v2999_v21 = vpop.f32.mrb[15].mxu0  ;;  %v3036_v26 = vpop.f32.mrb[13].mxu1 }
 0x117   : > { %v3000_v22 = vadd.f32 %v2999_v21, %v2998_v5  ;;  %v3037_v62 = vadd.f32 %v3036_v26, %v3035_v23  ;;  %v3038_v4 = vpop.f32.mrb[14].mxu1 }
 0x118   : > { %v3039_v27 = vpop.f32.mrb[15].mxu1 }
 0x119   : > { %v1785_v29 = vadd.f32 %v3037_v62, %v2997_v3  ;;  %v3040_v30 = vadd.f32 %v3039_v27, %v3038_v4  ;;  %v3888_v27 = vld [vmem:[%s4053_s5] ss:$0 sm:$0xff] }
 0x11b   : > { %v3057_v24 = vpop.f32.mrb[16].mxu0  ;;  %v1788_v33 = vadd.f32 %v3040_v30, %v3000_v22 }
 0x11c   : > { %v3058_v50 = vpop.f32.mrb[17].mxu0 }
 0x11d   : > { %v3059_v6 = vadd.f32 %v3058_v50, %v3057_v24  ;;  %v3060_v17 = vpop.f32.mrb[18].mxu0  ;;  %v3097_v35 = vpop.f32.mrb[16].mxu1 }
 0x11e   : > { %v3061_v28 = vpop.f32.mrb[19].mxu0  ;;  %v3098_v37 = vpop.f32.mrb[17].mxu1 }
 0x11f   : > { %v1826_v31 = vadd.f32 %v3059_v6, %v1761_v51  ;;  %v3062_v32 = vadd.f32 %v3061_v28, %v3060_v17  ;;  %v3099_v39 = vadd.f32 %v3098_v37, %v3097_v35  ;;  %v3100_v40 = vpop.f32.mrb[18].mxu1 }
 0x120   : > { %v3101_v43 = vpop.f32.mrb[19].mxu1 }
 0x121   : > { %v1829_v34 = vadd.f32 %v3062_v32, %v1764_v55  ;;  %v3102_v48 = vadd.f32 %v3101_v43, %v3100_v40  ;;  %v1891_v54 = vadd.f32 %v3099_v39, %v1826_v31  ;;  %v3895_v31 = vld [vmem:[%s4056_s8] ss:$0 sm:$0xff] }
 0x122   : > { %v3900_v32 = vld [vmem:[%s4054_s6] ss:$0 sm:$0xff] }
 0x123   : > { %v3063_v36 = vpop.f32.mrb[20].mxu0  ;;  %v1894_v57 = vadd.f32 %v3102_v48, %v1829_v34  ;;  %v3906_v39 = vld [vmem:[%s4057_s9] ss:$0 sm:$0xff] }
 0x124   : > { %v3064_v38 = vpop.f32.mrb[21].mxu0 }
 0x125   : > { %v3065_v41 = vadd.f32 %v3064_v38, %v3063_v36  ;;  %v3066_v42 = vpop.f32.mrb[22].mxu0  ;;  %v3103_v51 = vpop.f32.mrb[20].mxu1 }
 0x126   : > { %v3067_v47 = vpop.f32.mrb[23].mxu0  ;;  %v3104_v12 = vpop.f32.mrb[21].mxu1 }
 0x127   : > { %v1834_v52 = vadd.f32 %v3065_v41, %v1769_v60  ;;  %v3068_v53 = vadd.f32 %v3067_v47, %v3066_v42  ;;  %v3105_v25 = vadd.f32 %v3104_v12, %v3103_v51  ;;  %v3106_v44 = vpop.f32.mrb[22].mxu1 }
 0x128   : > { %v3107_v59 = vpop.f32.mrb[23].mxu1 }
 0x129   : > { %v1837_v56 = vadd.f32 %v3068_v53, %v1772_v0  ;;  %v3108_v63 = vadd.f32 %v3107_v59, %v3106_v44  ;;  %v1899_v8 = vadd.f32 %v3105_v25, %v1834_v52 }
 0x12b   : > { %v3069_v58 = vpop.f32.mrb[24].mxu0  ;;  %v1902_v60 = vadd.f32 %v3108_v63, %v1837_v56 }
 0x12c   : > { %v3070_v55 = vpop.f32.mrb[25].mxu0 }
 0x12d   : > { %v3071_v45 = vadd.f32 %v3070_v55, %v3069_v58  ;;  %v3072_v49 = vpop.f32.mrb[26].mxu0  ;;  %v3109_v10 = vpop.f32.mrb[24].mxu1 }
 0x12e   : > { %v3073_v61 = vpop.f32.mrb[27].mxu0  ;;  %v3110_v0 = vpop.f32.mrb[25].mxu1 }
 0x12f   : > { %v1842_v1 = vadd.f32 %v3071_v45, %v1777_v18  ;;  %v3074_v7 = vadd.f32 %v3073_v61, %v3072_v49  ;;  %v3111_v14 = vadd.f32 %v3110_v0, %v3109_v10  ;;  %v3112_v15 = vpop.f32.mrb[26].mxu1 }
 0x130   : > { %v3113_v19 = vpop.f32.mrb[27].mxu1 }
 0x131   : > { %v1845_v9 = vadd.f32 %v3074_v7, %v1780_v46  ;;  %v3114_v3 = vadd.f32 %v3113_v19, %v3112_v15  ;;  %v1907_v22 = vadd.f32 %v3111_v14, %v1842_v1 }
 0x133   : > { %v3075_v11 = vpop.f32.mrb[28].mxu0  ;;  %v3883_v18 = vadd.f32 %v3114_v3, %v1845_v9  ;;  %v2873_v3 = vld [vmem:[%s3861_s29 + $0x18] sm:$0xf] }
 0x134   : > { %v3076_v13 = vpop.f32.mrb[29].mxu0 }
 0x135   : > { %v3077_v16 = vadd.f32 %v3076_v13, %v3075_v11  ;;  %v3078_v2 = vpop.f32.mrb[30].mxu0  ;;  %v3115_v24 = vpop.f32.mrb[28].mxu1 }
 0x136   : > { %v3079_v20 = vpop.f32.mrb[31].mxu0  ;;  %v3116_v46 = vpop.f32.mrb[29].mxu1 }
 0x137   : > { %v1850_v5 = vadd.f32 %v3077_v16, %v1785_v29  ;;  %v3080_v21 = vadd.f32 %v3079_v20, %v3078_v2  ;;  %v3117_v26 = vadd.f32 %v3116_v46, %v3115_v24  ;;  %v3118_v50 = vpop.f32.mrb[30].mxu1 }
 0x138   : > { %v3119_v62 = vpop.f32.mrb[31].mxu1 }
 0x139   : > { %v1853_v23 = vadd.f32 %v3080_v21, %v1788_v33  ;;  %v3120_v4 = vadd.f32 %v3119_v62, %v3118_v50  ;;  %v1915_v6 = vadd.f32 %v3117_v26, %v1850_v5  ;;  %v2875_v5 = vld [vmem:[%s3861_s29 + $0x1c] sm:$0x1]  ;;  %v2865_v62 = vld [vmem:[%s3861_s29 + $0x8] sm:$0xf] }
 0x13b   : > { %v3163_v17 = vpop.f32.mrb[32].mxu0  ;;  %v3890_v28 = vadd.f32 %v3120_v4, %v1853_v23 }
 0x13c   : > { %v1964_v29 = vadd.f32 %v3163_v17, %v1899_v8  ;;  %v1955_v30 = vpop.f32.mrb[33].mxu0 }
 0x13d   : > { %v1956_v33 = vadd.f32 %v1955_v30, %v1891_v54  ;;  %v3164_v34 = vpop.f32.mrb[34].mxu0  ;;  %v3187_v38 = vpop.f32.mrb[32].mxu1 }
 0x13e   : > { %v1995_v35 = vmul.f32 %v3888_v27, %v1964_v29  ;;  %v1967_v36 = vadd.f32 %v3164_v34, %v1902_v60  ;;  %v1958_v37 = vpop.f32.mrb[35].mxu0  ;;  %v2381_v42 = vmul.f32 %v3187_v38, %v3895_v31  ;;  %v2341_v43 = vpop.f32.mrb[33].mxu1  ;;  %v2867_v34 = vld [vmem:[%s3861_s29 + $0xc] sm:$0x1] }
 0x13f   : > { %v1993_v40 = vmul.f32 %v3888_v27, %v1956_v33  ;;  %v1959_v41 = vadd.f32 %v1958_v37, %v1894_v57  ;;  %v2379_v52 = vmul.f32 %v3895_v31, %v2341_v43  ;;  %v3188_v53 = vpop.f32.mrb[34].mxu1  ;;  %v2877_v43 = vld [vmem:[%s3861_s29 + $0x20] sm:$0xf] }
 0x140   : > { %v2010_v47 = vadd.f32 %v3900_v32, %v1995_v35  ;;  %v1996_v48 = vmul.f32 %v3888_v27, %v1967_v36  ;;  %v2396_v51 = vadd.f32 %v3906_v39, %v2381_v42  ;;  %v2382_v57 = vmul.f32 %v3188_v53, %v3895_v31  ;;  %v2344_v58 = vpop.f32.mrb[35].mxu1  ;;  %v2879_v53 = vld [vmem:[%s3861_s29 + $0x24] sm:$0x1] }
 0x141   : > { %v2008_v54 = vadd.f32 %v3900_v32, %v1993_v40  ;;  %v1994_v56 = vmul.f32 %v3888_v27, %v1959_v41  ;;  %v2380_v25 = vmul.f32 %v3895_v31, %v2344_v58  ;;  %v3922_v59 = vadd.f32 %v3906_v39, %v2379_v52 }
 0x142   : > { %v2018_v12 = vmax.f32 %v2010_v47, 0.0  ;;  %v2011_v55 = vadd.f32 %v3900_v32, %v1996_v48  ;;  %v2397_v61 = vadd.f32 %v3906_v39, %v2382_v57 }
 0x143   : > { %v2016_v44 = vmax.f32 %v2008_v54, 0.0  ;;  %v2009_v45 = vadd.f32 %v3900_v32, %v1994_v56  ;;  %v3167_v49 = vpop.f32.mrb[36].mxu0  ;;  %v3931_v9 = vadd.f32 %v3906_v39, %v2380_v25  ;;  %v2871_v25 = vld [vmem:[%s3861_s29 + $0x14] sm:$0x1] }
 0x144   : > { %v2924_v63 = vpack.c.bf16 %v2018_v12, %v2018_v12  ;;  %v2019_v1 = vmax.f32 %v2011_v55, 0.0  ;;  %v1980_v7 = vadd.f32 %v3167_v49, %v1915_v6  ;;  %v1971_v8 = vpop.f32.mrb[37].mxu0  ;;  %v2946_v13 = vpack.c.bf16 %v2397_v61, %v2396_v51  ;;  %v2869_v55 = vld [vmem:[%s3861_s29 + $0x10] sm:$0xf] }
 0x145   : > { %v2922_v60 = vpack.c.bf16 %v2016_v44, %v2016_v44  ;;  %v2017_v10 = vmax.f32 %v2009_v45, 0.0  ;;  %v1972_v11 = vadd.f32 %v1971_v8, %v1907_v22  ;;  %v3933_v0 = vpop.f32.mrb[38].mxu0  ;;  %v3936_v20 = vpop.f32.mrb[36].mxu1 }
 0x146   : > { %v2093_v14 = vshrl.u32 %v2924_v63, 16  ;;  %v2096_v15 = vshll.u32 %v2924_v63, 16  ;;  %v2925_v16 = vpack.c.bf16 %v2019_v1, %v2019_v1  ;;  %v1999_v2 = vmul.f32 %v3888_v27, %v1980_v7  ;;  %v1974_v19 = vpop.f32.mrb[39].mxu0  ;;  %2958 = vst [vmem:[%s3928_s25 + $0x8] sm:$0xff] %v2946_v13   ;;  %v2357_v46 = vpop.f32.mrb[37].mxu1 }
 0x147   : > { %v2077_v21 = vshrl.u32 %v2922_v60, 16  ;;  %v2080_v23 = vshll.u32 %v2922_v60, 16  ;;  %v2923_v24 = vpack.c.bf16 %v2017_v10, %v2017_v10  ;;  %v1997_v22 = vmul.f32 %v3888_v27, %v1972_v11  ;;  %v3192_v29 = vpop.f32.mrb[38].mxu1 }
 0x148   : > { %v2095_v26 = vrot.slane %v2093_v14, 7  ;;  %v2101_v4 = vshrl.u32 %v2925_v16, 16  ;;  %v2104_v6 = vshll.u32 %v2925_v16, 16  ;;  %v2014_v17 = vadd.f32 %v3900_v32, %v1999_v2  ;;  %v2360_v38 = vpop.f32.mrb[39].mxu1 }
 0x149   : > { %v2079_v33 = vrot.slane %v2077_v21, 7  ;;  %v2085_v35 = vshrl.u32 %v2923_v24, 16  ;;  %v2088_v36 = vshll.u32 %v2923_v24, 16  ;;  %v2012_v37 = vadd.f32 %v3900_v32, %v1997_v22  ;;  %v2891_v22 = vld [vmem:[%s3861_s29 + $0x3c] sm:$0x1] }
 0x14a   : > { %v2098_v40 = vor.u32 %v2096_v15, %v2095_v26  ;;  %v2099_v41 = vrot.slane %v2095_v26, 4  ;;  %v2103_v42 = vrot.slane %v2101_v4, 7  ;;  %v2022_v47 = vmax.f32 %v2014_v17, 0.0  ;;  %v2881_v26 = vld [vmem:[%s3861_s29 + $0x28] sm:$0xf] }
 0x14b   : > { %v2082_v48 = vor.u32 %v2080_v23, %v2079_v33  ;;  %v2083_v52 = vrot.slane %v2079_v33, 4  ;;  %v2087_v54 = vrot.slane %v2085_v35, 7  ;;  %v2020_v56 = vmax.f32 %v2012_v37, 0.0 }
 0x14c   : > { %v2176_v51 = vsel %vm3944_vm4, %v2098_v40, %v2873_v3  ;;  %v2179_v57 = vsel %vm3952_vm5, %v2099_v41, %v2875_v5  ;;  %v2106_v58 = vor.u32 %v2104_v6, %v2103_v42  ;;  %v2107_v12 = vrot.slane %v2103_v42, 4 }
 0x14d   : > { %2874 = vst [vmem:[%s3861_s29 + $0x18] sm:$0xf] %v2176_v51  ;;  %2876 = vst [vmem:[%s3861_s29 + $0x1c] sm:$0x1] %v2179_v57  ;;  %v2161_v44 = vsel %vm3944_vm4, %v2082_v48, %v2865_v62  ;;  %v2167_v45 = vsel %vm3952_vm5, %v2083_v52, %v2867_v34  ;;  %v2090_v49 = vor.u32 %v2088_v36, %v2087_v54  ;;  %v2091_v61 = vrot.slane %v2087_v54, 4 }
 0x14e   : > { %2866 = vst [vmem:[%s3861_s29 + $0x8] sm:$0xf] %v2161_v44  ;;  %2868 = vst [vmem:[%s3861_s29 + $0xc] sm:$0x1] %v2167_v45  ;;  %v2182_v63 = vsel %vm3944_vm4, %v2106_v58, %v2877_v43  ;;  %v2185_v1 = vsel %vm3952_vm5, %v2107_v12, %v2879_v53  ;;  %v2928_v7 = vpack.c.bf16 %v2022_v47, %v2022_v47  ;;  %v2883_v62 = vld [vmem:[%s3861_s29 + $0x2c] sm:$0x1] }
 0x14f   : > { %v2926_v8 = vpack.c.bf16 %v2020_v56, %v2020_v56  ;;  %2878 = vst [vmem:[%s3861_s29 + $0x20] sm:$0xf] %v2182_v63  ;;  %2880 = vst [vmem:[%s3861_s29 + $0x24] sm:$0x1] %v2185_v1  ;;  %v2170_v60 = vsel %vm3944_vm4, %v2090_v49, %v2869_v55  ;;  %v2173_v10 = vsel %vm3952_vm5, %v2091_v61, %v2871_v25  ;;  %v2893_v54 = vld [vmem:[%s3861_s29 + $0x40] sm:$0xf] }
 0x150   : > { %v1983_v11 = vadd.f32 %v3933_v0, %v3890_v28  ;;  %v1975_v13 = vadd.f32 %v1974_v19, %v3883_v18  ;;  %2870 = vst [vmem:[%s3861_s29 + $0x10] sm:$0xf] %v2170_v60  ;;  %2872 = vst [vmem:[%s3861_s29 + $0x14] sm:$0x1] %v2173_v10  ;;  %v2125_v14 = vshrl.u32 %v2928_v7, 16  ;;  %v2128_v15 = vshll.u32 %v2928_v7, 16 }
 0x151   : > { %v2109_v16 = vshrl.u32 %v2926_v8, 16  ;;  %v2112_v2 = vshll.u32 %v2926_v8, 16  ;;  %v2941_v21 = vpack.c.bf16 %v3931_v9, %v3922_v59  ;;  %v2385_v18 = vmul.f32 %v3936_v20, %v3895_v31  ;;  %v2889_v0 = vld [vmem:[%s3861_s29 + $0x38] sm:$0xf]  ;;  %v2895_v57 = vld [vmem:[%s3861_s29 + $0x44] sm:$0x1] }
 0x152   : > { %v2000_v3 = vmul.f32 %v3888_v27, %v1983_v11  ;;  %v1998_v5 = vmul.f32 %v3888_v27, %v1975_v13  ;;  %v2127_v28 = vrot.slane %v2125_v14, 7  ;;  %v2383_v23 = vmul.f32 %v3895_v31, %v2357_v46  ;;  %v2885_v58 = vld [vmem:[%s3861_s29 + $0x30] sm:$0xf]  ;;  %v2887_v12 = vld [vmem:[%s3861_s29 + $0x34] sm:$0x1] }
 0x153   : > { %v2111_v19 = vrot.slane %v2109_v16, 7  ;;  %v2386_v24 = vmul.f32 %v3192_v29, %v3895_v31  ;;  %2942 = vst [vmem:[%s3928_s25] sm:$0xff] %v2941_v21   ;;  %v2400_v59 = vadd.f32 %v3906_v39, %v2385_v18  ;;  %v2384_v9 = vmul.f32 %v3895_v31, %v2360_v38 }
 0x154   : > { %v2015_v4 = vadd.f32 %v3900_v32, %v2000_v3  ;;  %v2013_v27 = vadd.f32 %v3900_v32, %v1998_v5  ;;  %v2130_v20 = vor.u32 %v2128_v15, %v2127_v28  ;;  %v2131_v46 = vrot.slane %v2127_v28, 4 }
 0x155   : > { %v2114_v6 = vor.u32 %v2112_v2, %v2111_v19  ;;  %v2115_v17 = vrot.slane %v2111_v19, 4  ;;  %v2398_v34 = vadd.f32 %v3906_v39, %v2383_v23  ;;  %v2401_v32 = vadd.f32 %v3906_v39, %v2386_v24 }
 0x156   : > { %v2023_v29 = vmax.f32 %v2015_v4, 0.0  ;;  %v2021_v33 = vmax.f32 %v2013_v27, 0.0  ;;  %v2200_v35 = vsel %vm3944_vm4, %v2130_v20, %v2889_v0  ;;  %v2203_v36 = vsel %vm3952_vm5, %v2131_v46, %v2891_v22 }
 0x157   : > { %v2188_v31 = vsel %vm3944_vm4, %v2114_v6, %v2881_v26  ;;  %v2191_v37 = vsel %vm3952_vm5, %v2115_v17, %v2883_v62  ;;  %2890 = vst [vmem:[%s3861_s29 + $0x38] sm:$0xf] %v2200_v35  ;;  %2892 = vst [vmem:[%s3861_s29 + $0x3c] sm:$0x1] %v2203_v36  ;;  %v2956_v41 = vpack.c.bf16 %v2401_v32, %v2400_v59 }
 0x158   : > { %2882 = vst [vmem:[%s3861_s29 + $0x28] sm:$0xf] %v2188_v31  ;;  %2884 = vst [vmem:[%s3861_s29 + $0x2c] sm:$0x1] %v2191_v37  ;;  %v2929_v38 = vpack.c.bf16 %v2023_v29, %v2023_v29  ;;  %v2927_v40 = vpack.c.bf16 %v2021_v33, %v2021_v33  ;;  %v2399_v42 = vadd.f32 %v3906_v39, %v2384_v9 }
 0x159   : > { %2960 = vst [vmem:[%s3928_s25 + $0x18] sm:$0xff] %v2956_v41  }
 0x15a   : > { %v2133_v43 = vshrl.u32 %v2929_v38, 16  ;;  %v2117_v47 = vshrl.u32 %v2927_v40, 16  ;;  %v2951_v48 = vpack.c.bf16 %v2399_v42, %v2398_v34  ;;  %v2136_v53 = vshll.u32 %v2929_v38, 16 }
 0x15b   : > { %v2120_v51 = vshll.u32 %v2927_v40, 16 }
 0x15c   : > { %v2135_v52 = vrot.slane %v2133_v43, 7  ;;  %v2119_v56 = vrot.slane %v2117_v47, 7  ;;  %2959 = vst [vmem:[%s3928_s25 + $0x10] sm:$0xff] %v2951_v48  }
 0x15e   : > { %v2138_v55 = vor.u32 %v2136_v53, %v2135_v52  ;;  %v2139_v25 = vrot.slane %v2135_v52, 4  ;;  %v2122_v39 = vor.u32 %v2120_v51, %v2119_v56  ;;  %v2123_v44 = vrot.slane %v2119_v56, 4 }
 0x160   : > { %v2206_v45 = vsel %vm3944_vm4, %v2138_v55, %v2893_v54  ;;  %v2209_v49 = vsel %vm3952_vm5, %v2139_v25, %v2895_v57  ;;  %v2194_v61 = vsel %vm3944_vm4, %v2122_v39, %v2885_v58  ;;  %v2197_v63 = vsel %vm3952_vm5, %v2123_v44, %v2887_v12 }
 0x161   : > { %2894 = vst [vmem:[%s3861_s29 + $0x40] sm:$0xf] %v2206_v45  ;;  %2896 = vst [vmem:[%s3861_s29 + $0x44] sm:$0x1] %v2209_v49 }
 0x162   : > { %2886 = vst [vmem:[%s3861_s29 + $0x30] sm:$0xf] %v2194_v61  ;;  %2888 = vst [vmem:[%s3861_s29 + $0x34] sm:$0x1] %v2197_v63 }
 0x163 PF: > { %s22_s19 = sadd.s32 1, %s3374_s19   ;;  %s4064_s17 = smov %s3370_s18 }
 0x164   : > { %p19_p5 = scmp.ge.s32.totalorder %s22_s19, 4   ;;  %s4065_s18 = smov %s4067_s20 }
 0x166   :  { %21 = sbr.rel (!%p19_p5) target bundleno = 2 (0x2), region = 132 }

</bundles_post_ra>
